<compile_context>
chip_gen: v6e
topology: v6e:2x2x1
jax: 0.10.0
libtpu: 0.0.40
codegen_flags: <defaults>
</compile_context>

<pallas_src>
import jax
import jax.numpy as jnp
from jax import lax
from jax.experimental import pallas as pl
from jax.experimental.pallas import tpu as pltpu

BN_EPS = 1e-5
VMEM_LIMIT_BYTES = 48 * 1024 * 1024   # > default scoped VMEM on v5e/v6e/v7x,
                                      # < physical VMEM on every generation.
PATCH_BYTES_BUDGET = 2 << 20          # per-row-tile (TH*W, 9C) patch scratch
EW_TILE_BYTES = 4 << 20               # element-wise pass per-tile byte budget


# --------------------------------------------------------------------------
# Small helpers (tiling decisions)
# --------------------------------------------------------------------------
def _round_up(x, m):
    return (x + m - 1) // m * m


def _pick_th(H, W, C):
    """Largest divisor of H whose (TH*W, 9C) f32 patch slab fits the budget."""
    best = 1
    for th in range(1, H + 1):
        if H % th == 0 and th * W * 9 * C * 4 <= PATCH_BYTES_BUDGET:
            best = th
    return best


def _pick_rows(M, bytes_per_row, min_tiles=2):
    """Row tile for the element-wise pass: multiple of 8, byte-budgeted,
    >= min_tiles tiles when possible.  Returns (tile_rows, row_padding)."""
    cap = min(M, max(8, EW_TILE_BYTES // max(bytes_per_row, 1)))
    if M >= 16 * min_tiles:
        cap = min(cap, M // min_tiles)
    cap = max(8, cap // 8 * 8)
    for tr in range(cap, 7, -8):
        if M % tr == 0:
            return tr, 0
    return cap, _round_up(M, cap) - M            # pad rows, slice away later


# --------------------------------------------------------------------------
# Conv3x3 (+ optional fused BN1 affine/ReLU on the input) + packed BN stats
# --------------------------------------------------------------------------
def _make_conv_kernel(H, W, C, Cpad, TH, nh, fused_affine_relu):
    """conv3x3(pad=1, stride=1) on one NHWC image, entirely in VMEM.

    Zero-pads the activation into a VMEM scratch, builds the (TH*W, 9C)
    patch slab from shifted slices and runs one MXU matmul per row tile.
    Also emits packed per-image BN partial statistics (sum, sum of squares).
    If `fused_affine_relu`, the input is first mapped through
    relu(scale*y + shift) (layer-1 BN folded into the conv2 stage)."""

    def kernel(*refs):
        if fused_affine_relu:
            a_ref, ss_ref, w_ref, y_ref, st_ref, xpad_scr, patch_scr = refs
        else:
            a_ref, w_ref, y_ref, st_ref, xpad_scr, patch_scr = refs

        act = a_ref[0]                                   # (H, W, C or Cpad)
        if fused_affine_relu:
            ss = ss_ref[...]
            sc = ss[0:1, :].reshape(1, 1, Cpad)
            sh = ss[1:2, :].reshape(1, 1, Cpad)
            act = jnp.maximum(act * sc + sh, 0.0)[:, :, :C]

        # Zero-padded activation (halo ring = 0).  Re-zeroed every step so the
        # kernel is correct under megacore grid sharding.
        xpad_scr[...] = jnp.zeros_like(xpad_scr)
        xpad_scr[1:H + 1, 1:W + 1, :] = act

        s = jnp.zeros((1, Cpad), jnp.float32)
        q = jnp.zeros((1, Cpad), jnp.float32)
        for t in range(nh):                              # static unroll
            r0 = t * TH
            for ky in range(3):
                for kx in range(3):
                    tap = ky * 3 + kx
                    patch_scr[:, :, tap * C:(tap + 1) * C] = (
                        xpad_scr[r0 + ky:r0 + ky + TH, kx:kx + W, :])
            y = jnp.dot(patch_scr[...].reshape(TH * W, 9 * C), w_ref[...],
                        preferred_element_type=jnp.float32)
            y_ref[0, r0:r0 + TH, :, :] = y.reshape(TH, W, Cpad)
            s = s + jnp.sum(y, axis=0, keepdims=True)
            q = q + jnp.sum(y * y, axis=0, keepdims=True)
        st_ref[0] = jnp.concatenate([s, q], axis=0)      # row0=sum, row1=sumsq

    return kernel


def _conv3x3_bn_stats(act, w_mat, scale_shift, *, C, Cpad, th_rows):
    """act: (N, H, W, Ca) NHWC, w_mat: (9C, Cpad) with zero-padded columns.
    Returns raw conv output (N, H, W, Cpad) and per-image packed statistics
    (N, 2, Cpad) (row 0 = sum over H*W, row 1 = sum of squares)."""
    N, H, W, Ca = act.shape
    TH = th_rows
    nh = H // TH
    fused = scale_shift is not None
    kernel = _make_conv_kernel(H, W, C, Cpad, TH, nh, fused)

    in_specs = [pl.BlockSpec((1, H, W, Ca), lambda n: (n, 0, 0, 0))]
    args = [act]
    if fused:
        in_specs.append(pl.BlockSpec((2, Cpad), lambda n: (0, 0)))   # resident
        args.append(scale_shift)
    in_specs.append(pl.BlockSpec((9 * C, Cpad), lambda n: (0, 0)))   # resident
    args.append(w_mat)

    flops = 2 * N * H * W * 9 * C * Cpad
    bytes_accessed = 4 * (act.size + w_mat.size
                          + N * H * W * Cpad + N * 2 * Cpad)

    return pl.pallas_call(
        kernel,
        out_shape=(jax.ShapeDtypeStruct((N, H, W, Cpad), jnp.float32),
                   jax.ShapeDtypeStruct((N, 2, Cpad), jnp.float32)),
        grid=(N,),
        in_specs=in_specs,
        out_specs=(pl.BlockSpec((1, H, W, Cpad), lambda n: (n, 0, 0, 0)),
                   pl.BlockSpec((1, 2, Cpad), lambda n: (n, 0, 0))),
        scratch_shapes=[pltpu.VMEM((H + 2, W + 2, C), jnp.float32),
                        pltpu.VMEM((TH, W, 9 * C), jnp.float32)],
        compiler_params=pltpu.CompilerParams(
            dimension_semantics=("parallel",),
            vmem_limit_bytes=VMEM_LIMIT_BYTES),
        cost_estimate=pl.CostEstimate(flops=flops, transcendentals=0,
                                      bytes_accessed=bytes_accessed),
    )(*args)


# --------------------------------------------------------------------------
# Final element-wise pass: out = relu(scale2*y2 + shift2 + residual)
# --------------------------------------------------------------------------
def _make_bn_add_relu_kernel(C):
    def kernel(y_ref, ss_ref, r_ref, o_ref):
        y = y_ref[...][:, :C]                    # drop lane-padding channels
        ss = ss_ref[...]
        o_ref[...] = jnp.maximum(
            y * ss[0:1, :] + ss[1:2, :] + r_ref[...], 0.0)
    return kernel


def _bn_add_relu(y2, scale_shift, residual, *, C, Cpad):
    """y2: (M, Cpad) raw conv2 output, residual: (M, C) -> (M, C)."""
    M = y2.shape[0]
    tr, pad = _pick_rows(M, 4 * (Cpad + 2 * C))
    if pad:
        y2 = jnp.pad(y2, ((0, pad), (0, 0)))
        residual = jnp.pad(residual, ((0, pad), (0, 0)))
    Mp = M + pad
    nt = Mp // tr
    out = pl.pallas_call(
        _make_bn_add_relu_kernel(C),
        out_shape=jax.ShapeDtypeStruct((Mp, C), jnp.float32),
        grid=(nt,),
        in_specs=[pl.BlockSpec((tr, Cpad), lambda i: (i, 0)),
                  pl.BlockSpec((2, C), lambda i: (0, 0)),
                  pl.BlockSpec((tr, C), lambda i: (i, 0))],
        out_specs=pl.BlockSpec((tr, C), lambda i: (i, 0)),
        compiler_params=pltpu.CompilerParams(
            dimension_semantics=("parallel",),
            vmem_limit_bytes=VMEM_LIMIT_BYTES),
        cost_estimate=pl.CostEstimate(
            flops=4 * Mp * C, transcendentals=0,
            bytes_accessed=4 * (Mp * Cpad + 2 * Mp * C + 2 * C)),
    )(y2, scale_shift, residual)
    return out[:M] if pad else out


# --------------------------------------------------------------------------
# JAX glue (layout plumbing + BN statistics reduction)
# --------------------------------------------------------------------------
def _w_torch_to_mat(w_oihw, Cpad):
    """(Cout, Cin, 3, 3) torch layout -> (9*Cin, Cpad).
    Contraction index = (ky*3 + kx)*Cin + ci; extra output columns are 0."""
    Cout, Cin, _, _ = w_oihw.shape
    w = jnp.transpose(w_oihw.astype(jnp.float32),
                      (2, 3, 1, 0)).reshape(9 * Cin, Cout)
    if Cpad > Cout:
        w = jnp.pad(w, ((0, 0), (0, Cpad - Cout)))
    return w


def _bn_scale_shift(stats, gamma, beta, m_count, C):
    """Reduce per-image packed stats -> per-channel BN affine (batch stats)."""
    s = jnp.sum(stats[:, 0, :C], axis=0)
    q = jnp.sum(stats[:, 1, :C], axis=0)
    mean = s / m_count
    var = jnp.maximum(q / m_count - mean * mean, 0.0)
    scale = gamma.astype(jnp.float32) * lax.rsqrt(var + BN_EPS)
    shift = beta.astype(jnp.float32) - mean * scale
    return scale, shift


def _pack_scale_shift(scale, shift, Cpad):
    C = scale.shape[0]
    ss = jnp.zeros((2, Cpad), jnp.float32)
    return ss.at[0, :C].set(scale).at[1, :C].set(shift)


def basic_block_forward(x_nchw, w1, g1, b1, w2, g2, b2):
    """BasicBlock(inplanes == planes, stride=1, downsample=None) forward,
    training-mode BatchNorm (batch statistics), f32 semantics."""
    N, C, H, W = x_nchw.shape
    M = N * H * W
    Cpad = _round_up(C, 128)             # lane-dense conv outputs & stats

    x = jnp.transpose(x_nchw, (0, 2, 3, 1)).astype(jnp.float32)   # NHWC
    w1m = _w_torch_to_mat(w1, Cpad)
    w2m = _w_torch_to_mat(w2, Cpad)
    th = _pick_th(H, W, C)

    # conv1 + packed per-image BN1 partial statistics.  Raw y1 stays in HBM,
    # lane-dense; its BN1 affine + ReLU are applied inside the conv2 kernel.
    y1, st1 = _conv3x3_bn_stats(x, w1m, None, C=C, Cpad=Cpad, th_rows=th)
    sc1, sh1 = _bn_scale_shift(st1, g1, b1, M, C)
    ss1 = _pack_scale_shift(sc1, sh1, Cpad)

    # conv2 with BN1 affine + ReLU fused into the in-VMEM patch build.
    y2, st2 = _conv3x3_bn_stats(y1, w2m, ss1, C=C, Cpad=Cpad, th_rows=th)
    sc2, sh2 = _bn_scale_shift(st2, g2, b2, M, C)
    ss2 = jnp.stack([sc2, sh2], axis=0)                    # (2, C)

    # out = relu(bn2(y2) + x)
    out2d = _bn_add_relu(y2.reshape(M, Cpad), ss2, x.reshape(M, C),
                         C=C, Cpad=Cpad)
    return jnp.transpose(out2d.reshape(N, H, W, C), (0, 3, 1, 2))


# --------------------------------------------------------------------------
# Pure-JAX reference (module semantics) for correctness check
# --------------------------------------------------------------------------
def _reference_forward(x, w1, g1, b1, w2, g2, b2):
    def conv(a, w):
        return lax.conv_general_dilated(
            a, w, window_strides=(1, 1), padding=((1, 1), (1, 1)),
            dimension_numbers=("NCHW", "OIHW", "NCHW"))

    def bn(y, g, b):
        mean = jnp.mean(y, axis=(0, 2, 3), keepdims=True)
        var = jnp.mean((y - mean) ** 2, axis=(0, 2, 3), keepdims=True)
        return ((y - mean) * lax.rsqrt(var + BN_EPS)
                * g.reshape(1, -1, 1, 1) + b.reshape(1, -1, 1, 1))

    out = jax.nn.relu(bn(conv(x, w1), g1, b1))
    out = bn(conv(out, w2), g2, b2)
    return jax.nn.relu(out + x)


if __name__ == "__main__":
    key = jax.random.PRNGKey(0)
    k_x, k_w1, k_w2, k_g1, k_b1, k_g2, k_b2 = jax.random.split(key, 7)

    N, C, H, W = 2, 4, 16, 16    # inplanes == planes, stride=1, no downsample
    x = jax.random.normal(k_x, (N, C, H, W), jnp.float32)
    w1 = jax.random.normal(k_w1, (C, C, 3, 3), jnp.float32) * 0.1
    w2 = jax.random.normal(k_w2, (C, C, 3, 3), jnp.float32) * 0.1
    g1 = 1.0 + 0.1 * jax.random.normal(k_g1, (C,), jnp.float32)
    b1 = 0.1 * jax.random.normal(k_b1, (C,), jnp.float32)
    g2 = 1.0 + 0.1 * jax.random.normal(k_g2, (C,), jnp.float32)
    b2 = 0.1 * jax.random.normal(k_b2, (C,), jnp.float32)

    out = jax.block_until_ready(basic_block_forward(x, w1, g1, b1, w2, g2, b2))

    ref = _reference_forward(x, w1, g1, b1, w2, g2, b2)
    assert out.shape == ref.shape == (N, C, H, W)
    assert jnp.allclose(out, ref, atol=1e-4, rtol=1e-4), (
        float(jnp.max(jnp.abs(out - ref))))

    print("KERNEL_OK")
</pallas_src>

<mosaic_0001>
module attributes {stable_mosaic.version = 11 : i64} {
  func.func @kernel(%arg0: i32, %arg1: memref<1x16x16x4xf32, #tpu.memory_space<vmem>>, %arg2: memref<36x128xf32, #tpu.memory_space<vmem>>, %arg3: memref<1x16x16x128xf32, #tpu.memory_space<vmem>>, %arg4: memref<1x2x128xf32, #tpu.memory_space<vmem>>, %arg5: memref<18x18x4xf32, #tpu.memory_space<vmem>>, %arg6: memref<16x16x36xf32, #tpu.memory_space<vmem>>) attributes {dimension_semantics = [#tpu.dimension_semantics<parallel>], iteration_bounds = array<i64: 2>, scalar_prefetch = 0 : i64, scratch_operands = 2 : i64, tpu.core_type = #tpu.core_type<tc>, window_params = [{transform_indices = @transform_0, window_bounds = array<i64: 1, 16, 16, 4>}, {pipeline_mode = #tpu.pipeline_mode<synchronous>, transform_indices = @transform_1, window_bounds = array<i64: 36, 128>}, {transform_indices = @transform_2, window_bounds = array<i64: 1, 16, 16, 128>}, {transform_indices = @transform_3, window_bounds = array<i64: 1, 2, 128>}]} {
    %c0 = arith.constant 0 : index
    %c0_0 = arith.constant 0 : index
    %c0_1 = arith.constant 0 : index
    %c0_2 = arith.constant 0 : index
    %0 = vector.load %arg1[%c0, %c0_0, %c0_1, %c0_2] : memref<1x16x16x4xf32, #tpu.memory_space<vmem>>, vector<1x16x16x4xf32>
    %1 = vector.shape_cast %0 : vector<1x16x16x4xf32> to vector<16x16x4xf32>
    %cst = arith.constant 0.000000e+00 : f32
    %2 = vector.broadcast %cst : f32 to vector<18x18x4xf32>
    %c0_3 = arith.constant 0 : index
    %c0_4 = arith.constant 0 : index
    %c0_5 = arith.constant 0 : index
    %3 = vector.load %arg5[%c0_3, %c0_4, %c0_5] : memref<18x18x4xf32, #tpu.memory_space<vmem>>, vector<18x18x4xf32>
    tpu.vector_store %arg5[%c0_3, %c0_4, %c0_5], %2 {strides = array<i32>} : memref<18x18x4xf32, #tpu.memory_space<vmem>>, vector<18x18x4xf32>,
    %c1 = arith.constant 1 : index
    %c1_6 = arith.constant 1 : index
    %c0_7 = arith.constant 0 : index
    %4 = vector.load %arg5[%c1, %c1_6, %c0_7] : memref<18x18x4xf32, #tpu.memory_space<vmem>>, vector<16x16x4xf32>
    tpu.vector_store %arg5[%c1, %c1_6, %c0_7], %1 {strides = array<i32>} : memref<18x18x4xf32, #tpu.memory_space<vmem>>, vector<16x16x4xf32>,
    %cst_8 = arith.constant 0.000000e+00 : f32
    %5 = vector.broadcast %cst_8 : f32 to vector<1x128xf32>
    %cst_9 = arith.constant 0.000000e+00 : f32
    %6 = vector.broadcast %cst_9 : f32 to vector<1x128xf32>
    %c0_10 = arith.constant 0 : index
    %c0_11 = arith.constant 0 : index
    %c0_12 = arith.constant 0 : index
    %7 = vector.load %arg5[%c0_10, %c0_11, %c0_12] : memref<18x18x4xf32, #tpu.memory_space<vmem>>, vector<16x16x4xf32>
    %c0_13 = arith.constant 0 : index
    %c0_14 = arith.constant 0 : index
    %c0_15 = arith.constant 0 : index
    %8 = vector.load %arg6[%c0_13, %c0_14, %c0_15] : memref<16x16x36xf32, #tpu.memory_space<vmem>>, vector<16x16x4xf32>
    tpu.vector_store %arg6[%c0_13, %c0_14, %c0_15], %7 {strides = array<i32>} : memref<16x16x36xf32, #tpu.memory_space<vmem>>, vector<16x16x4xf32>,
    %c0_16 = arith.constant 0 : index
    %c1_17 = arith.constant 1 : index
    %c0_18 = arith.constant 0 : index
    %9 = vector.load %arg5[%c0_16, %c1_17, %c0_18] : memref<18x18x4xf32, #tpu.memory_space<vmem>>, vector<16x16x4xf32>
    %c0_19 = arith.constant 0 : index
    %c0_20 = arith.constant 0 : index
    %c4 = arith.constant 4 : index
    %10 = vector.load %arg6[%c0_19, %c0_20, %c4] : memref<16x16x36xf32, #tpu.memory_space<vmem>>, vector<16x16x4xf32>
    tpu.vector_store %arg6[%c0_19, %c0_20, %c4], %9 {strides = array<i32>} : memref<16x16x36xf32, #tpu.memory_space<vmem>>, vector<16x16x4xf32>,
    %c0_21 = arith.constant 0 : index
    %c2 = arith.constant 2 : index
    %c0_22 = arith.constant 0 : index
    %11 = vector.load %arg5[%c0_21, %c2, %c0_22] : memref<18x18x4xf32, #tpu.memory_space<vmem>>, vector<16x16x4xf32>
    %c0_23 = arith.constant 0 : index
    %c0_24 = arith.constant 0 : index
    %c8 = arith.constant 8 : index
    %12 = vector.load %arg6[%c0_23, %c0_24, %c8] : memref<16x16x36xf32, #tpu.memory_space<vmem>>, vector<16x16x4xf32>
    tpu.vector_store %arg6[%c0_23, %c0_24, %c8], %11 {strides = array<i32>} : memref<16x16x36xf32, #tpu.memory_space<vmem>>, vector<16x16x4xf32>,
    %c1_25 = arith.constant 1 : index
    %c0_26 = arith.constant 0 : index
    %c0_27 = arith.constant 0 : index
    %13 = vector.load %arg5[%c1_25, %c0_26, %c0_27] : memref<18x18x4xf32, #tpu.memory_space<vmem>>, vector<16x16x4xf32>
    %c0_28 = arith.constant 0 : index
    %c0_29 = arith.constant 0 : index
    %c12 = arith.constant 12 : index
    %14 = vector.load %arg6[%c0_28, %c0_29, %c12] : memref<16x16x36xf32, #tpu.memory_space<vmem>>, vector<16x16x4xf32>
    tpu.vector_store %arg6[%c0_28, %c0_29, %c12], %13 {strides = array<i32>} : memref<16x16x36xf32, #tpu.memory_space<vmem>>, vector<16x16x4xf32>,
    %c1_30 = arith.constant 1 : index
    %c1_31 = arith.constant 1 : index
    %c0_32 = arith.constant 0 : index
    %15 = vector.load %arg5[%c1_30, %c1_31, %c0_32] : memref<18x18x4xf32, #tpu.memory_space<vmem>>, vector<16x16x4xf32>
    %c0_33 = arith.constant 0 : index
    %c0_34 = arith.constant 0 : index
    %c16 = arith.constant 16 : index
    %16 = vector.load %arg6[%c0_33, %c0_34, %c16] : memref<16x16x36xf32, #tpu.memory_space<vmem>>, vector<16x16x4xf32>
    tpu.vector_store %arg6[%c0_33, %c0_34, %c16], %15 {strides = array<i32>} : memref<16x16x36xf32, #tpu.memory_space<vmem>>, vector<16x16x4xf32>,
    %c1_35 = arith.constant 1 : index
    %c2_36 = arith.constant 2 : index
    %c0_37 = arith.constant 0 : index
    %17 = vector.load %arg5[%c1_35, %c2_36, %c0_37] : memref<18x18x4xf32, #tpu.memory_space<vmem>>, vector<16x16x4xf32>
    %c0_38 = arith.constant 0 : index
    %c0_39 = arith.constant 0 : index
    %c20 = arith.constant 20 : index
    %18 = vector.load %arg6[%c0_38, %c0_39, %c20] : memref<16x16x36xf32, #tpu.memory_space<vmem>>, vector<16x16x4xf32>
    tpu.vector_store %arg6[%c0_38, %c0_39, %c20], %17 {strides = array<i32>} : memref<16x16x36xf32, #tpu.memory_space<vmem>>, vector<16x16x4xf32>,
    %c2_40 = arith.constant 2 : index
    %c0_41 = arith.constant 0 : index
    %c0_42 = arith.constant 0 : index
    %19 = vector.load %arg5[%c2_40, %c0_41, %c0_42] : memref<18x18x4xf32, #tpu.memory_space<vmem>>, vector<16x16x4xf32>
    %c0_43 = arith.constant 0 : index
    %c0_44 = arith.constant 0 : index
    %c24 = arith.constant 24 : index
    %20 = vector.load %arg6[%c0_43, %c0_44, %c24] : memref<16x16x36xf32, #tpu.memory_space<vmem>>, vector<16x16x4xf32>
    tpu.vector_store %arg6[%c0_43, %c0_44, %c24], %19 {strides = array<i32>} : memref<16x16x36xf32, #tpu.memory_space<vmem>>, vector<16x16x4xf32>,
    %c2_45 = arith.constant 2 : index
    %c1_46 = arith.constant 1 : index
    %c0_47 = arith.constant 0 : index
    %21 = vector.load %arg5[%c2_45, %c1_46, %c0_47] : memref<18x18x4xf32, #tpu.memory_space<vmem>>, vector<16x16x4xf32>
    %c0_48 = arith.constant 0 : index
    %c0_49 = arith.constant 0 : index
    %c28 = arith.constant 28 : index
    %22 = vector.load %arg6[%c0_48, %c0_49, %c28] : memref<16x16x36xf32, #tpu.memory_space<vmem>>, vector<16x16x4xf32>
    tpu.vector_store %arg6[%c0_48, %c0_49, %c28], %21 {strides = array<i32>} : memref<16x16x36xf32, #tpu.memory_space<vmem>>, vector<16x16x4xf32>,
    %c2_50 = arith.constant 2 : index
    %c2_51 = arith.constant 2 : index
    %c0_52 = arith.constant 0 : index
    %23 = vector.load %arg5[%c2_50, %c2_51, %c0_52] : memref<18x18x4xf32, #tpu.memory_space<vmem>>, vector<16x16x4xf32>
    %c0_53 = arith.constant 0 : index
    %c0_54 = arith.constant 0 : index
    %c32 = arith.constant 32 : index
    %24 = vector.load %arg6[%c0_53, %c0_54, %c32] : memref<16x16x36xf32, #tpu.memory_space<vmem>>, vector<16x16x4xf32>
    tpu.vector_store %arg6[%c0_53, %c0_54, %c32], %23 {strides = array<i32>} : memref<16x16x36xf32, #tpu.memory_space<vmem>>, vector<16x16x4xf32>,
    %c0_55 = arith.constant 0 : index
    %c0_56 = arith.constant 0 : index
    %c0_57 = arith.constant 0 : index
    %25 = vector.load %arg6[%c0_55, %c0_56, %c0_57] : memref<16x16x36xf32, #tpu.memory_space<vmem>>, vector<16x16x36xf32>
    %26 = vector.shape_cast %25 : vector<16x16x36xf32> to vector<256x36xf32>
    %c0_58 = arith.constant 0 : index
    %c0_59 = arith.constant 0 : index
    %27 = vector.load %arg2[%c0_58, %c0_59] : memref<36x128xf32, #tpu.memory_space<vmem>>, vector<36x128xf32>
    %cst_60 = arith.constant dense<0.000000e+00> : vector<256x128xf32>
    %28 = tpu.matmul %26, %27, %cst_60 {dimension_numbers = #tpu.dot_dimension_numbers<[1], [0], [0], [1], [0, 0, 1, 1], [], []>} : vector<256x36xf32>, vector<36x128xf32>, vector<256x128xf32> -> vector<256x128xf32>
    %29 = vector.shape_cast %28 : vector<256x128xf32> to vector<16x16x128xf32>
    %c0_61 = arith.constant 0 : index
    %c0_62 = arith.constant 0 : index
    %c0_63 = arith.constant 0 : index
    %c0_64 = arith.constant 0 : index
    %30 = vector.load %arg3[%c0_61, %c0_62, %c0_63, %c0_64] : memref<1x16x16x128xf32, #tpu.memory_space<vmem>>, vector<1x16x16x128xf32>
    %31 = vector.shape_cast %30 : vector<1x16x16x128xf32> to vector<16x16x128xf32>
    %32 = vector.shape_cast %29 : vector<16x16x128xf32> to vector<1x16x16x128xf32>
    tpu.vector_store %arg3[%c0_61, %c0_62, %c0_63, %c0_64], %32 {strides = array<i32>} : memref<1x16x16x128xf32, #tpu.memory_space<vmem>>, vector<1x16x16x128xf32>,
    %cst_65 = arith.constant dense<0.000000e+00> : vector<128xf32>
    %33 = vector.multi_reduction <add>, %28, %cst_65 [0] : vector<256x128xf32> to vector<128xf32>
    %34 = vector.shape_cast %33 : vector<128xf32> to vector<1x128xf32>
    %35 = arith.addf %5, %34 : vector<1x128xf32>
    %36 = arith.mulf %28, %28 : vector<256x128xf32>
    %cst_66 = arith.constant dense<0.000000e+00> : vector<128xf32>
    %37 = vector.multi_reduction <add>, %36, %cst_66 [0] : vector<256x128xf32> to vector<128xf32>
    %38 = vector.shape_cast %37 : vector<128xf32> to vector<1x128xf32>
    %39 = arith.addf %6, %38 : vector<1x128xf32>
    %40 = tpu.concatenate %35, %39 in 0 : vector<1x128xf32>, vector<1x128xf32> -> vector<2x128xf32>
    %c0_67 = arith.constant 0 : index
    %c0_68 = arith.constant 0 : index
    %c0_69 = arith.constant 0 : index
    %41 = vector.load %arg4[%c0_67, %c0_68, %c0_69] : memref<1x2x128xf32, #tpu.memory_space<vmem>>, vector<1x2x128xf32>
    %42 = vector.shape_cast %41 : vector<1x2x128xf32> to vector<2x128xf32>
    %43 = vector.shape_cast %40 : vector<2x128xf32> to vector<1x2x128xf32>
    tpu.vector_store %arg4[%c0_67, %c0_68, %c0_69], %43 {strides = array<i32>} : memref<1x2x128xf32, #tpu.memory_space<vmem>>, vector<1x2x128xf32>,
    return
  }
  func.func @transform_0(%arg0: i32) -> (i32, i32, i32, i32) {
    %c0_i32 = arith.constant 0 : i32
    %c0_i32_0 = arith.constant 0 : i32
    %c0_i32_1 = arith.constant 0 : i32
    %c0_i32_2 = arith.constant 0 : i32
    return %arg0, %c0_i32, %c0_i32_0, %c0_i32_1 : i32, i32, i32, i32
  }
  func.func @transform_1(%arg0: i32) -> (i32, i32) {
    %c0_i32 = arith.constant 0 : i32
    %c0_i32_0 = arith.constant 0 : i32
    %c0_i32_1 = arith.constant 0 : i32
    return %c0_i32, %c0_i32_0 : i32, i32
  }
  func.func @transform_2(%arg0: i32) -> (i32, i32, i32, i32) {
    %c0_i32 = arith.constant 0 : i32
    %c0_i32_0 = arith.constant 0 : i32
    %c0_i32_1 = arith.constant 0 : i32
    %c0_i32_2 = arith.constant 0 : i32
    return %arg0, %c0_i32, %c0_i32_0, %c0_i32_1 : i32, i32, i32, i32
  }
  func.func @transform_3(%arg0: i32) -> (i32, i32, i32) {
    %c0_i32 = arith.constant 0 : i32
    %c0_i32_0 = arith.constant 0 : i32
    %c0_i32_1 = arith.constant 0 : i32
    return %arg0, %c0_i32, %c0_i32_0 : i32, i32, i32
  }
}

</mosaic_0001>

<bundles_post_ra>
// kernel: tpu_custom_call.1
= control target key start
LH: loop header
LB: loop body
LE: loop exit
PB: predicated region body
PF: predicated region fallthrough
CT: control target
= control target key end

     0   :  { %9 = vsyncpa [#allocation5], 0  ;;  %s4006_s0 = inlined_call_operand.vmem [shape: f32[2,16,16,4], index: 0, kind: input, shape index: {}]   ;;  %s4007_s1 = inlined_call_operand.vmem [shape: f32[36,128], index: 1, kind: input, shape index: {}]   ;;  %s4008_s2 = inlined_call_operand.hbm [shape: f32[2,16,16,128], index: 2, kind: output, shape index: {0}]   ;;  %s4009_s3 = inlined_call_operand.hbm [shape: f32[2,2,128], index: 3, kind: output, shape index: {1}]  }
   0x1   :  { %11 = vsyncpa [#allocation5 + $0x1], 0 }
   0x2   :  { %12 = vsyncpa [#allocation7], 0 }
   0x3   :  { %14 = vsyncpa [#allocation7 + $0x1], 0  ;;  %s2875_s12 = smov 0   ;;  %s2877_s13 = smov 0  }
   0x4   :  { %s2879_s14 = smov 0   ;;  %s2881_s15 = smov 0  }
   0x5 LB: > { %s2896_s16 = sadd.s32 4294967295, %s2841_s15   ;;  %s2542_s17 = sadd.s32 4294967294, %s2841_s15   ;;  %s2841_s15 = sphi %s2881_s15, %s4015_s15   ;;  %s2837_s14 = sphi %s2879_s14, %s4014_s14   ;;  %s2833_s13 = sphi %s2877_s13, %s4013_s13   ;;  %s2829_s12 = sphi %s2875_s12, %s4012_s12  }
   0x6   : > { %s2900_s18 = sadd.s32 1, %s2841_s15   ;;  %s74_s19 = sadd.s32 1, %s2837_s14 }
   0x7   : > { %s71_s20 = ssub.s32 %s2841_s15, %s2900_s18  ;;  %p84_p0 = scmp.ne.s32.totalorder %s2837_s14, %s2833_s13 }
   0x8   : > { %p72_p1 = scmp.eq.s32.totalorder %s71_s20, 0  ;;  %p85_p2 = scmp.eq.s32.totalorder %s2896_s16, 1 }
   0x9   : > { %p90_p3 = scmp.ne.s32.totalorder %s2833_s13, %s2829_s12  ;;  %p91_p4 = scmp.eq.s32.totalorder %s2542_s17, 1 }
   0xa   : > { %s2911_s21 = scalar_select %p72_p1, %s2837_s14, %s74_s19  }
   0xb   : > { %p2913_p5 = por %p85_p2, %p84_p0  ;;  %p2917_p6 = por %p91_p4, %p90_p3 }
   0xc   : > { %p2545_p7 = scmp.ge.s32.totalorder %s2841_s15, 1  ;;  %p146_p8 = scmp.lt.s32.totalorder %s2841_s15, 3 }
   0xe   : > { %p147_p9 = pnand %p2545_p7, %p146_p8 }
   0xf   : > { %p175_p10 = scmp.lt.s32.totalorder (!%p147_p9), %s2896_s16, 1  ;;  %s2844_s29 = smov (!%p147_p9), 4  }
  0x10   : > { %150 = sbr.rel (%p147_p9) target bundleno = 925 (0x39d), region = 28  ;;  %s2845_s30 = smov (!%p147_p9), 8  }
  0x11   : > { %s2846_s4 = smov (!%p147_p9), 12   ;;  %s2847_s5 = smov (!%p147_p9), 16  }
  0x12   : > { %s2848_s6 = smov (!%p147_p9), 20   ;;  %s2849_s7 = smov (!%p147_p9), 24  }
  0x13   : > { %s2850_s17 = smov (!%p147_p9), 28   ;;  %s2852_s19 = smov (!%p147_p9), [#allocation4]  }
  0x14   : > { %s2755_s20 = sshll.u32 (!%p147_p9), %s2852_s19, 4  ;;  %s2756_s20 = int_to_ptr.vmem [resolvable:$false] %s2755_s20 }
  0x15   : > { %vm212_vm0 = vcmask 31744   ;;  %vm215_vm1 = vcmask 25600   ;;  %v2843_v0 = vmov 0.0   ;;  %s176_s24 = scalar_select %p175_p10, %s2896_s16, 1  ;;  %vm525_vm2 = vcmask 64544  }
  0x16   : > { %213 = vst.msk [vmem:[#allocation2] sm:$0xff] %vm212_vm0, %v2843_v0  ;;  %214 = vst.msk [vmem:[#allocation2 + $0x8] sm:$0xff] %vm212_vm0, %v2843_v0  ;;  %vm718_vm3 = vcmask 97344   ;;  %vm2044_vm4 = vcmask 1043456   ;;  %vm911_vm5 = vcmask 130144   ;;  %vm1104_vm6 = vcmask 162944  }
  0x17   : > { %217 = vst.msk [vmem:[#allocation2 + $0x18] sm:$0xff] %vm212_vm0, %v2843_v0  ;;  %218 = vst.msk [vmem:[#allocation2 + $0x20] sm:$0xff] %vm212_vm0, %v2843_v0  ;;  %s2590_s25 = sshll.u32 %s176_s24, 8  ;;  %s2851_s24 = smov 32   ;;  %vm1297_vm7 = vcmask 195744   ;;  %vm1491_vm8 = vcmask 228544  }
  0x18   : > { %220 = vst.msk [vmem:[#allocation2 + $0x30] sm:$0xff] %vm212_vm0, %v2843_v0  ;;  %221 = vst.msk [vmem:[#allocation2 + $0x38] sm:$0xff] %vm212_vm0, %v2843_v0  ;;  %s2984_s28 = scalar_lea.vmem %s4006_s0, %s2590_s25  ;;  %vm1684_vm9 = vcmask 261344   ;;  %vm1877_vm10 = vcmask 294144   ;;  %vm1947_vm11 = vcmask 293888  }
  0x19   : > { %223 = vst.msk [vmem:[#allocation2 + $0x48] sm:$0xff] %vm212_vm0, %v2843_v0  ;;  %224 = vst.msk [vmem:[#allocation2 + $0x50] sm:$0xff] %vm212_vm0, %v2843_v0  ;;  %v180_v1 = vld [vmem:[%s2984_s28] sm:$0xff]  ;;  %v182_v2 = vld [vmem:[%s2984_s28 + $0x10] sm:$0xff] }
  0x1a   : > { %226 = vst.msk [vmem:[#allocation2 + $0x60] sm:$0xff] %vm212_vm0, %v2843_v0  ;;  %227 = vst.msk [vmem:[#allocation2 + $0x68] sm:$0xff] %vm212_vm0, %v2843_v0  ;;  %v181_v3 = vld [vmem:[%s2984_s28 + $0x8] sm:$0xff]  ;;  %v184_v4 = vld [vmem:[%s2984_s28 + $0x20] sm:$0xff] }
  0x1b   : > { %229 = vst.msk [vmem:[#allocation2 + $0x78] sm:$0xff] %vm212_vm0, %v2843_v0  ;;  %230 = vst.msk [vmem:[#allocation2 + $0x80] sm:$0xff] %vm212_vm0, %v2843_v0  ;;  %v183_v5 = vld [vmem:[%s2984_s28 + $0x18] sm:$0xff]  ;;  %v186_v6 = vld [vmem:[%s2984_s28 + $0x30] sm:$0xff] }
  0x1c   : > { %232 = vst.msk [vmem:[#allocation2 + $0x90] sm:$0xff] %vm212_vm0, %v2843_v0  ;;  %233 = vst.msk [vmem:[#allocation2 + $0x98] sm:$0xff] %vm212_vm0, %v2843_v0  ;;  %v185_v9 = vld [vmem:[%s2984_s28 + $0x28] sm:$0xff]  ;;  %v188_v10 = vld [vmem:[%s2984_s28 + $0x40] sm:$0xff] }
  0x1d   : > { %235 = vst.msk [vmem:[#allocation2 + $0xa8] sm:$0xff] %vm212_vm0, %v2843_v0  ;;  %236 = vst.msk [vmem:[#allocation2 + $0xb0] sm:$0xff] %vm212_vm0, %v2843_v0  ;;  %v365_v7 = vld [vmem:[#allocation2 + $0x1] sm:$0xff]  ;;  %v187_v11 = vld [vmem:[%s2984_s28 + $0x38] sm:$0xff] }
  0x1e   : > { %238 = vst.msk [vmem:[#allocation2 + $0xc0] sm:$0xff] %vm212_vm0, %v2843_v0  ;;  %239 = vst.msk [vmem:[#allocation2 + $0xc8] sm:$0xff] %vm212_vm0, %v2843_v0  ;;  %429 = vrot.lane.b32.xlu0 %v365_v7, %s2844_s29  ;;  %v190_v12 = vld [vmem:[%s2984_s28 + $0x50] sm:$0xff]  ;;  %v189_v13 = vld [vmem:[%s2984_s28 + $0x48] sm:$0xff] }
  0x1f   : > { %241 = vst.msk [vmem:[#allocation2 + $0xd8] sm:$0xff] %vm212_vm0, %v2843_v0  ;;  %242 = vst.msk [vmem:[#allocation2 + $0xe0] sm:$0xff] %vm212_vm0, %v2843_v0  ;;  %v192_v14 = vld [vmem:[%s2984_s28 + $0x60] sm:$0xff]  ;;  %v191_v15 = vld [vmem:[%s2984_s28 + $0x58] sm:$0xff] }
  0x20   : > { %244 = vst.msk [vmem:[#allocation2 + $0xf0] sm:$0xff] %vm212_vm0, %v2843_v0  ;;  %245 = vst.msk [vmem:[#allocation2 + $0xf8] sm:$0xff] %vm212_vm0, %v2843_v0  ;;  %v194_v16 = vld [vmem:[%s2984_s28 + $0x70] sm:$0xff]  ;;  %v193_v17 = vld [vmem:[%s2984_s28 + $0x68] sm:$0xff] }
  0x21   : > { %247 = vst.msk [vmem:[#allocation2 + $0x108] sm:$0xff] %vm212_vm0, %v2843_v0  ;;  %248 = vst.msk [vmem:[#allocation2 + $0x110] sm:$0xff] %vm212_vm0, %v2843_v0  ;;  %v196_v18 = vld [vmem:[%s2984_s28 + $0x80] sm:$0xff]  ;;  %v195_v19 = vld [vmem:[%s2984_s28 + $0x78] sm:$0xff] }
  0x22   : > { %250 = vst.msk [vmem:[#allocation2 + $0x120] sm:$0xff] %vm212_vm0, %v2843_v0  ;;  %251 = vst.msk [vmem:[#allocation2 + $0x128] sm:$0xff] %vm212_vm0, %v2843_v0  ;;  %v198_v20 = vld [vmem:[%s2984_s28 + $0x90] sm:$0xff]  ;;  %v197_v21 = vld [vmem:[%s2984_s28 + $0x88] sm:$0xff] }
  0x23   : > { %253 = vst.msk [vmem:[#allocation2 + $0x138] sm:$0xff] %vm212_vm0, %v2843_v0  ;;  %254 = vst.msk [vmem:[#allocation2 + $0x140] sm:$0xff] %vm212_vm0, %v2843_v0  ;;  %v200_v22 = vld [vmem:[%s2984_s28 + $0xa0] sm:$0xff]  ;;  %v199_v23 = vld [vmem:[%s2984_s28 + $0x98] sm:$0xff] }
  0x24   : > { %256 = vst.msk [vmem:[#allocation2 + $0x150] sm:$0xff] %vm212_vm0, %v2843_v0  ;;  %257 = vst.msk [vmem:[#allocation2 + $0x158] sm:$0xff] %vm212_vm0, %v2843_v0  ;;  %v202_v24 = vld [vmem:[%s2984_s28 + $0xb0] sm:$0xff]  ;;  %v201_v28 = vld [vmem:[%s2984_s28 + $0xa8] sm:$0xff] }
  0x25   : > { %259 = vst.msk [vmem:[#allocation2 + $0x168] sm:$0xff] %vm212_vm0, %v2843_v0  ;;  %260 = vst.msk [vmem:[#allocation2 + $0x170] sm:$0xff] %vm212_vm0, %v2843_v0  ;;  %v204_v29 = vld [vmem:[%s2984_s28 + $0xc0] sm:$0xff]  ;;  %v203_v33 = vld [vmem:[%s2984_s28 + $0xb8] sm:$0xff] }
  0x26   : > { %262 = vst.msk [vmem:[#allocation2 + $0x180] sm:$0xff] %vm212_vm0, %v2843_v0  ;;  %263 = vst.msk [vmem:[#allocation2 + $0x188] sm:$0xff] %vm212_vm0, %v2843_v0  ;;  %v206_v34 = vld [vmem:[%s2984_s28 + $0xd0] sm:$0xff]  ;;  %v205_v35 = vld [vmem:[%s2984_s28 + $0xc8] sm:$0xff] }
  0x27   : > { %265 = vst.msk [vmem:[#allocation2 + $0x198] sm:$0xff] %vm212_vm0, %v2843_v0  ;;  %266 = vst.msk [vmem:[#allocation2 + $0x1a0] sm:$0xff] %vm212_vm0, %v2843_v0  ;;  %v208_v36 = vld [vmem:[%s2984_s28 + $0xe0] sm:$0xff]  ;;  %v207_v37 = vld [vmem:[%s2984_s28 + $0xd8] sm:$0xff] }
  0x28   : > { %216 = vst.msk [vmem:[#allocation2 + $0x10] sm:$0x3] %vm215_vm1, %v2843_v0  ;;  %219 = vst.msk [vmem:[#allocation2 + $0x28] sm:$0x3] %vm215_vm1, %v2843_v0  ;;  %v209_v39 = vld [vmem:[%s2984_s28 + $0xe8] sm:$0xff]  ;;  %v301_v45 = vld [vmem:[#allocation2] sm:$0xff] }
  0x29   : > { %222 = vst.msk [vmem:[#allocation2 + $0x40] sm:$0x3] %vm215_vm1, %v2843_v0  ;;  %225 = vst.msk [vmem:[#allocation2 + $0x58] sm:$0x3] %vm215_vm1, %v2843_v0  ;;  %v302_v46 = vld [vmem:[#allocation2 + $0x8] sm:$0xff] }
  0x2a   : > { %228 = vst.msk [vmem:[#allocation2 + $0x70] sm:$0x3] %vm215_vm1, %v2843_v0  ;;  %231 = vst.msk [vmem:[#allocation2 + $0x88] sm:$0x3] %vm215_vm1, %v2843_v0 }
  0x2b   : > { %234 = vst.msk [vmem:[#allocation2 + $0xa0] sm:$0x3] %vm215_vm1, %v2843_v0  ;;  %237 = vst.msk [vmem:[#allocation2 + $0xb8] sm:$0x3] %vm215_vm1, %v2843_v0 }
  0x2c   : > { %240 = vst.msk [vmem:[#allocation2 + $0xd0] sm:$0x3] %vm215_vm1, %v2843_v0  ;;  %243 = vst.msk [vmem:[#allocation2 + $0xe8] sm:$0x3] %vm215_vm1, %v2843_v0 }
  0x2d   : > { %246 = vst.msk [vmem:[#allocation2 + $0x100] sm:$0x3] %vm215_vm1, %v2843_v0  ;;  %249 = vst.msk [vmem:[#allocation2 + $0x118] sm:$0x3] %vm215_vm1, %v2843_v0 }
  0x2e   : > { %252 = vst.msk [vmem:[#allocation2 + $0x130] sm:$0x3] %vm215_vm1, %v2843_v0  ;;  %255 = vst.msk [vmem:[#allocation2 + $0x148] sm:$0x3] %vm215_vm1, %v2843_v0 }
  0x2f   : > { %258 = vst.msk [vmem:[#allocation2 + $0x160] sm:$0x3] %vm215_vm1, %v2843_v0  ;;  %261 = vst.msk [vmem:[#allocation2 + $0x178] sm:$0x3] %vm215_vm1, %v2843_v0  ;;  %v366_v8 = vld [vmem:[#allocation2 + $0x9] sm:$0xff] }
  0x30   : > { %264 = vst.msk [vmem:[#allocation2 + $0x190] sm:$0x3] %vm215_vm1, %v2843_v0  ;;  %267 = vst.msk [vmem:[#allocation2 + $0x1a8] sm:$0x3] %vm215_vm1, %v2843_v0  ;;  %431 = vrot.lane.b32.xlu0 %v366_v8, %s2844_s29 }
  0x31   : > { %269 = vst.msk [vmem:[#allocation2 + $0x19] sm:$0xff] %vm212_vm0, %v180_v1  ;;  %271 = vst.msk [vmem:[#allocation2 + $0x31] sm:$0xff] %vm212_vm0, %v182_v2 }
  0x32   : > { %270 = vst.msk [vmem:[#allocation2 + $0x21] sm:$0xff] %vm212_vm0, %v181_v3  ;;  %273 = vst.msk [vmem:[#allocation2 + $0x49] sm:$0xff] %vm212_vm0, %v184_v4 }
  0x33   : > { %272 = vst.msk [vmem:[#allocation2 + $0x39] sm:$0xff] %vm212_vm0, %v183_v5  ;;  %275 = vst.msk [vmem:[#allocation2 + $0x61] sm:$0xff] %vm212_vm0, %v186_v6 }
  0x34   : > { %274 = vst.msk [vmem:[#allocation2 + $0x51] sm:$0xff] %vm212_vm0, %v185_v9  ;;  %277 = vst.msk [vmem:[#allocation2 + $0x79] sm:$0xff] %vm212_vm0, %v188_v10 }
  0x35   : > { %276 = vst.msk [vmem:[#allocation2 + $0x69] sm:$0xff] %vm212_vm0, %v187_v11  ;;  %279 = vst.msk [vmem:[#allocation2 + $0x91] sm:$0xff] %vm212_vm0, %v190_v12 }
  0x36   : > { %278 = vst.msk [vmem:[#allocation2 + $0x81] sm:$0xff] %vm212_vm0, %v189_v13  ;;  %281 = vst.msk [vmem:[#allocation2 + $0xa9] sm:$0xff] %vm212_vm0, %v192_v14 }
  0x37   : > { %280 = vst.msk [vmem:[#allocation2 + $0x99] sm:$0xff] %vm212_vm0, %v191_v15  ;;  %283 = vst.msk [vmem:[#allocation2 + $0xc1] sm:$0xff] %vm212_vm0, %v194_v16 }
  0x38   : > { %282 = vst.msk [vmem:[#allocation2 + $0xb1] sm:$0xff] %vm212_vm0, %v193_v17  ;;  %285 = vst.msk [vmem:[#allocation2 + $0xd9] sm:$0xff] %vm212_vm0, %v196_v18  ;;  %v3029_v25 = vld [vmem:[#allocation2 + $0x19] sm:$0xff]  ;;  %v3031_v26 = vld [vmem:[#allocation2 + $0x31] sm:$0xff] }
  0x39   : > { %284 = vst.msk [vmem:[#allocation2 + $0xc9] sm:$0xff] %vm212_vm0, %v195_v19  ;;  %287 = vst.msk [vmem:[#allocation2 + $0xf1] sm:$0xff] %vm212_vm0, %v198_v20  ;;  %433 = vrot.lane.b32.xlu1 %v3029_v25, %s2844_s29  ;;  %v3038_v27 = vld [vmem:[#allocation2 + $0x21] sm:$0xff]  ;;  %437 = vrot.lane.b32.xlu0 %v3031_v26, %s2844_s29  ;;  %v3046_v30 = vld [vmem:[#allocation2 + $0x49] sm:$0xff] }
  0x3a   : > { %286 = vst.msk [vmem:[#allocation2 + $0xe1] sm:$0xff] %vm212_vm0, %v197_v21  ;;  %289 = vst.msk [vmem:[#allocation2 + $0x109] sm:$0xff] %vm212_vm0, %v200_v22  ;;  %v3050_v31 = vld [vmem:[#allocation2 + $0x39] sm:$0xff]  ;;  %v3054_v32 = vld [vmem:[#allocation2 + $0x61] sm:$0xff] }
  0x3b   : > { %288 = vst.msk [vmem:[#allocation2 + $0xf9] sm:$0xff] %vm212_vm0, %v199_v23  ;;  %291 = vst.msk [vmem:[#allocation2 + $0x121] sm:$0xff] %vm212_vm0, %v202_v24  ;;  %v3066_v38 = vld [vmem:[#allocation2 + $0x51] sm:$0xff]  ;;  %v3074_v40 = vld [vmem:[#allocation2 + $0x79] sm:$0xff] }
  0x3c   : > { %290 = vst.msk [vmem:[#allocation2 + $0x111] sm:$0xff] %vm212_vm0, %v201_v28  ;;  %293 = vst.msk [vmem:[#allocation2 + $0x139] sm:$0xff] %vm212_vm0, %v204_v29  ;;  %v3078_v41 = vld [vmem:[#allocation2 + $0x69] sm:$0xff]  ;;  %v3082_v42 = vld [vmem:[#allocation2 + $0x91] sm:$0xff] }
  0x3d   : > { %435 = vrot.lane.b32.xlu1 %v3038_v27, %s2844_s29  ;;  %441 = vrot.lane.b32.xlu0 %v3046_v30, %s2844_s29  ;;  %292 = vst.msk [vmem:[#allocation2 + $0x129] sm:$0xff] %vm212_vm0, %v203_v33  ;;  %295 = vst.msk [vmem:[#allocation2 + $0x151] sm:$0xff] %vm212_vm0, %v206_v34  ;;  %v3086_v43 = vld [vmem:[#allocation2 + $0x81] sm:$0xff]  ;;  %v379_v44 = vld [vmem:[#allocation2 + $0xa9] sm:$0xff] }
  0x3e   : > { %294 = vst.msk [vmem:[#allocation2 + $0x141] sm:$0xff] %vm212_vm0, %v205_v35  ;;  %297 = vst.msk [vmem:[#allocation2 + $0x169] sm:$0xff] %vm212_vm0, %v208_v36  ;;  %v3093_v47 = vld [vmem:[#allocation2 + $0x99] sm:$0xff]  ;;  %v3101_v49 = vld [vmem:[#allocation2 + $0x30] sm:$0xff] }
  0x3f   : > { %296 = vst.msk [vmem:[#allocation2 + $0x159] sm:$0xff] %vm212_vm0, %v207_v37  ;;  %298 = vst.msk [vmem:[#allocation2 + $0x171] sm:$0xff] %vm212_vm0, %v209_v39  ;;  %v3096_v48 = vld [vmem:[#allocation2 + $0x18] sm:$0xff]  ;;  %v381_v50 = vld [vmem:[#allocation2 + $0xc1] sm:$0xff] }
  0x40   : > { %333 = vst.msk [vmem:[#allocation3] sm:$0xff] %vm212_vm0, %v301_v45  ;;  %334 = vst.msk [vmem:[#allocation3 + $0x8] sm:$0xff] %vm212_vm0, %v302_v46  ;;  %v3105_v51 = vld [vmem:[#allocation2 + $0x20] sm:$0xff]  ;;  %v3107_v52 = vld [vmem:[#allocation2 + $0x48] sm:$0xff] }
  0x41   : > { %439 = vrot.lane.b32.xlu1 %v3050_v31, %s2844_s29  ;;  %445 = vrot.lane.b32.xlu0 %v3054_v32, %s2844_s29  ;;  %335 = vst.msk [vmem:[#allocation3 + $0x10] sm:$0xff] %vm212_vm0, %v3096_v48  ;;  %337 = vst.msk [vmem:[#allocation3 + $0x20] sm:$0xff] %vm212_vm0, %v3101_v49  ;;  %v380_v53 = vld [vmem:[#allocation2 + $0xb1] sm:$0xff]  ;;  %v3117_v55 = vld [vmem:[#allocation2 + $0x60] sm:$0xff] }
  0x42   : > { %336 = vst.msk [vmem:[#allocation3 + $0x18] sm:$0xff] %vm212_vm0, %v3105_v51  ;;  %339 = vst.msk [vmem:[#allocation3 + $0x30] sm:$0xff] %vm212_vm0, %v3107_v52  ;;  %v3115_v54 = vld [vmem:[#allocation2 + $0x38] sm:$0xff]  ;;  %v3123_v57 = vld [vmem:[#allocation2 + $0x50] sm:$0xff] }
  0x43   : > { %v383_v56 = vld [vmem:[#allocation2 + $0xd9] sm:$0xff]  ;;  %338 = vst.msk [vmem:[#allocation3 + $0x28] sm:$0xff] %vm212_vm0, %v3115_v54  ;;  %341 = vst.msk [vmem:[#allocation3 + $0x40] sm:$0xff] %vm212_vm0, %v3117_v55  ;;  %v3127_v59 = vld [vmem:[#allocation2 + $0x68] sm:$0xff] }
  0x44   : > { %v3125_v58 = vld [vmem:[#allocation2 + $0x78] sm:$0xff]  ;;  %340 = vst.msk [vmem:[#allocation3 + $0x38] sm:$0xff] %vm212_vm0, %v3123_v57  ;;  %342 = vst.msk [vmem:[#allocation3 + $0x48] sm:$0xff] %vm212_vm0, %v3127_v59  ;;  %v3136_v60 = vld [vmem:[#allocation2 + $0x90] sm:$0xff] }
  0x45   : > { %443 = vrot.lane.b32.xlu1 %v3066_v38, %s2844_s29  ;;  %449 = vrot.lane.b32.xlu0 %v3074_v40, %s2844_s29  ;;  %343 = vst.msk [vmem:[#allocation3 + $0x50] sm:$0xff] %vm212_vm0, %v3125_v58  ;;  %v3138_v61 = vld [vmem:[#allocation2 + $0x80] sm:$0xff]  ;;  %v3140_v62 = vld [vmem:[#allocation2 + $0xa8] sm:$0xff]  ;;  %345 = vst.msk [vmem:[#allocation3 + $0x60] sm:$0xff] %vm212_vm0, %v3136_v60 }
  0x46   : > { %v382_v63 = vld [vmem:[#allocation2 + $0xc9] sm:$0xff]  ;;  %344 = vst.msk [vmem:[#allocation3 + $0x58] sm:$0xff] %vm212_vm0, %v3138_v61  ;;  %347 = vst.msk [vmem:[#allocation3 + $0x70] sm:$0xff] %vm212_vm0, %v3140_v62  ;;  %v3148_v0 = vld [vmem:[#allocation2 + $0x98] sm:$0xff] }
  0x47   : > { %v3150_v1 = vld [vmem:[#allocation2 + $0xc0] sm:$0xff]  ;;  %v3152_v2 = vld [vmem:[#allocation2 + $0xb0] sm:$0xff]  ;;  %346 = vst.msk [vmem:[#allocation3 + $0x68] sm:$0xff] %vm212_vm0, %v3148_v0  ;;  %v3161_v3 = vld [vmem:[#allocation2 + $0xd8] sm:$0xff] }
  0x48   : > { %349 = vst.msk [vmem:[#allocation3 + $0x80] sm:$0xff] %vm212_vm0, %v3150_v1  ;;  %348 = vst.msk [vmem:[#allocation3 + $0x78] sm:$0xff] %vm212_vm0, %v3152_v2  ;;  %v3163_v4 = vld [vmem:[#allocation2 + $0xc8] sm:$0xff]  ;;  %v3165_v5 = vld [vmem:[#allocation2 + $0xf0] sm:$0xff] }
  0x49   : > { %447 = vrot.lane.b32.xlu1 %v3078_v41, %s2844_s29  ;;  %453 = vrot.lane.b32.xlu0 %v3082_v42, %s2844_s29  ;;  %351 = vst.msk [vmem:[#allocation3 + $0x90] sm:$0xff] %vm212_vm0, %v3161_v3  ;;  %350 = vst.msk [vmem:[#allocation3 + $0x88] sm:$0xff] %vm212_vm0, %v3163_v4  ;;  %v3173_v6 = vld [vmem:[#allocation2 + $0xe0] sm:$0xff]  ;;  %v3175_v7 = vld [vmem:[#allocation2 + $0x108] sm:$0xff] }
  0x4a   : > { %353 = vst.msk [vmem:[#allocation3 + $0xa0] sm:$0xff] %vm212_vm0, %v3165_v5  ;;  %v3177_v8 = vld [vmem:[#allocation2 + $0xf8] sm:$0xff]  ;;  %352 = vst.msk [vmem:[#allocation3 + $0x98] sm:$0xff] %vm212_vm0, %v3173_v6  ;;  %v3186_v9 = vld [vmem:[#allocation2 + $0x120] sm:$0xff] }
  0x4b   : > { %355 = vst.msk [vmem:[#allocation3 + $0xb0] sm:$0xff] %vm212_vm0, %v3175_v7  ;;  %354 = vst.msk [vmem:[#allocation3 + $0xa8] sm:$0xff] %vm212_vm0, %v3177_v8  ;;  %v3188_v10 = vld [vmem:[#allocation2 + $0x110] sm:$0xff]  ;;  %v327_v12 = vld [vmem:[#allocation2 + $0x138] sm:$0xff] }
  0x4c   : > { %v385_v11 = vld [vmem:[#allocation2 + $0xf1] sm:$0xff]  ;;  %357 = vst.msk [vmem:[#allocation3 + $0xc0] sm:$0xff] %vm212_vm0, %v3186_v9  ;;  %356 = vst.msk [vmem:[#allocation3 + $0xb8] sm:$0xff] %vm212_vm0, %v3188_v10  ;;  %v384_v13 = vld [vmem:[#allocation2 + $0xe1] sm:$0xff] }
  0x4d   : > { %451 = vrot.lane.b32.xlu1 %v3086_v43, %s2844_s29  ;;  %457 = vrot.lane.b32.xlu0 %v379_v44, %s2844_s29  ;;  %359 = vst.msk [vmem:[#allocation3 + $0xd0] sm:$0xff] %vm212_vm0, %v327_v12  ;;  %v3196_v14 = vld [vmem:[#allocation2 + $0x128] sm:$0xff]  ;;  %v329_v16 = vld [vmem:[#allocation2 + $0x150] sm:$0xff]  ;;  %v386_v17 = vld [vmem:[#allocation2 + $0xf9] sm:$0xff] }
  0x4e   : > { %358 = vst.msk [vmem:[#allocation3 + $0xc8] sm:$0xff] %vm212_vm0, %v3196_v14  ;;  %v387_v15 = vld [vmem:[#allocation2 + $0x109] sm:$0xff]  ;;  %361 = vst.msk [vmem:[#allocation3 + $0xe0] sm:$0xff] %vm212_vm0, %v329_v16  ;;  %v328_v18 = vld [vmem:[#allocation2 + $0x140] sm:$0xff] }
  0x4f   : > { %360 = vst.msk [vmem:[#allocation3 + $0xd8] sm:$0xff] %vm212_vm0, %v328_v18  ;;  %v389_v19 = vld [vmem:[#allocation2 + $0x121] sm:$0xff]  ;;  %v388_v21 = vld [vmem:[#allocation2 + $0x111] sm:$0xff]  ;;  %v391_v23 = vld [vmem:[#allocation2 + $0x139] sm:$0xff] }
  0x50   : > { %v331_v20 = vld [vmem:[#allocation2 + $0x168] sm:$0xff]  ;;  %v330_v22 = vld [vmem:[#allocation2 + $0x158] sm:$0xff]  ;;  %v332_v28 = vld [vmem:[#allocation2 + $0x170] sm:$0xff] }
  0x51   : > { %455 = vrot.lane.b32.xlu1 %v3093_v47, %s2844_s29  ;;  %461 = vrot.lane.b32.xlu0 %v381_v50, %s2844_s29  ;;  %363 = vst.msk [vmem:[#allocation3 + $0xf0] sm:$0xff] %vm212_vm0, %v331_v20  ;;  %362 = vst.msk [vmem:[#allocation3 + $0xe8] sm:$0xff] %vm212_vm0, %v330_v22  ;;  %v390_v24 = vld [vmem:[#allocation2 + $0x129] sm:$0xff]  ;;  %v393_v29 = vld [vmem:[#allocation2 + $0x151] sm:$0xff] }
  0x52   : > { %364 = vst.msk [vmem:[#allocation3 + $0xf8] sm:$0xff] %vm212_vm0, %v332_v28  ;;  %v392_v33 = vld [vmem:[#allocation2 + $0x141] sm:$0xff]  ;;  %v395_v34 = vld [vmem:[#allocation2 + $0x169] sm:$0xff]  ;;  %v394_v35 = vld [vmem:[#allocation2 + $0x159] sm:$0xff] }
  0x53   : > { %v558_v36 = vld [vmem:[#allocation2 + $0x2] sm:$0xff]  ;;  %v396_v37 = vld [vmem:[#allocation2 + $0x171] sm:$0xff]  ;;  %v3218_v39 = vld [vmem:[#allocation2 + $0x1a] sm:$0xff] }
  0x54   : > { %v559_v44 = vld [vmem:[#allocation2 + $0xa] sm:$0xff]  ;;  %v3223_v45 = vld [vmem:[#allocation2 + $0x32] sm:$0xff]  ;;  %v3226_v46 = vld [vmem:[#allocation2 + $0x22] sm:$0xff] }
  0x55   : > { %459 = vrot.lane.b32.xlu1 %v380_v53, %s2844_s29  ;;  %465 = vrot.lane.b32.xlu0 %v383_v56, %s2844_s29  ;;  %v3230_v50 = vld [vmem:[#allocation2 + $0x4a] sm:$0xff]  ;;  %v3234_v53 = vld [vmem:[#allocation2 + $0x3a] sm:$0xff]  ;;  %v3238_v56 = vld [vmem:[#allocation2 + $0x62] sm:$0xff] }
  0x56   : > { %v3250_v12 = vld [vmem:[#allocation2 + $0x6a] sm:$0xff]  ;;  %v3270_v18 = vld [vmem:[#allocation2 + $0xc2] sm:$0xff]  ;;  %v576_v20 = vld [vmem:[#allocation2 + $0xda] sm:$0xff] }
  0x57   : > { %v3262_v16 = vld [vmem:[#allocation2 + $0xaa] sm:$0xff]  ;;  %v578_v22 = vld [vmem:[#allocation2 + $0xf2] sm:$0xff]  ;;  %v579_v28 = vld [vmem:[#allocation2 + $0xfa] sm:$0xff] }
  0x59   : > { %463 = vrot.lane.b32.xlu1 %v382_v63, %s2844_s29  ;;  %469 = vrot.lane.b32.xlu0 %v385_v11, %s2844_s29  ;;  %v3242_v63 = vld [vmem:[#allocation2 + $0x52] sm:$0xff]  ;;  %v3246_v11 = vld [vmem:[#allocation2 + $0x7a] sm:$0xff] }
  0x5d   : > { %467 = vrot.lane.b32.xlu1 %v384_v13, %s2844_s29  ;;  %473 = vrot.lane.b32.xlu0 %v387_v15, %s2844_s29  ;;  %v3254_v13 = vld [vmem:[#allocation2 + $0x92] sm:$0xff]  ;;  %v3258_v15 = vld [vmem:[#allocation2 + $0x82] sm:$0xff] }
  0x61   : > { %471 = vrot.lane.b32.xlu1 %v386_v17, %s2844_s29  ;;  %477 = vrot.lane.b32.xlu0 %v389_v19, %s2844_s29  ;;  %v3266_v17 = vld [vmem:[#allocation2 + $0x9a] sm:$0xff]  ;;  %v3274_v19 = vld [vmem:[#allocation2 + $0xb2] sm:$0xff] }
  0x65   : > { %475 = vrot.lane.b32.xlu1 %v388_v21, %s2844_s29  ;;  %481 = vrot.lane.b32.xlu0 %v391_v23, %s2844_s29  ;;  %v3280_v21 = vld [vmem:[#allocation2 + $0xca] sm:$0xff]  ;;  %v577_v23 = vld [vmem:[#allocation2 + $0xe2] sm:$0xff] }
  0x69   : > { %479 = vrot.lane.b32.xlu1 %v390_v24, %s2844_s29  ;;  %485 = vrot.lane.b32.xlu0 %v393_v29, %s2844_s29  ;;  %v580_v24 = vld [vmem:[#allocation2 + $0x10a] sm:$0xff]  ;;  %v582_v29 = vld [vmem:[#allocation2 + $0x122] sm:$0xff] }
  0x6d   : > { %483 = vrot.lane.b32.xlu1 %v392_v33, %s2844_s29  ;;  %489 = vrot.lane.b32.xlu0 %v395_v34, %s2844_s29  ;;  %v581_v33 = vld [vmem:[#allocation2 + $0x112] sm:$0xff]  ;;  %v584_v34 = vld [vmem:[#allocation2 + $0x13a] sm:$0xff] }
  0x71   : > { %487 = vrot.lane.b32.xlu1 %v394_v35, %s2844_s29  ;;  %622 = vrot.lane.b32.xlu0 %v558_v36, %s2845_s30  ;;  %v583_v36 = vld [vmem:[#allocation2 + $0x12a] sm:$0xff] }
  0x75   : > { %491 = vrot.lane.b32.xlu1 %v396_v37, %s2844_s29  ;;  %626 = vrot.lane.b32.xlu0 %v3218_v39, %s2845_s30  ;;  %v586_v37 = vld [vmem:[#allocation2 + $0x152] sm:$0xff] }
  0x79   : > { %624 = vrot.lane.b32.xlu1 %v559_v44, %s2845_s30  ;;  %630 = vrot.lane.b32.xlu0 %v3223_v45, %s2845_s30 }
  0x7d   : > { %628 = vrot.lane.b32.xlu1 %v3226_v46, %s2845_s30  ;;  %634 = vrot.lane.b32.xlu0 %v3230_v50, %s2845_s30 }
  0x81   : > { %632 = vrot.lane.b32.xlu1 %v3234_v53, %s2845_s30  ;;  %638 = vrot.lane.b32.xlu0 %v3238_v56, %s2845_s30 }
  0x85   : > { %636 = vrot.lane.b32.xlu1 %v3242_v63, %s2845_s30  ;;  %642 = vrot.lane.b32.xlu0 %v3246_v11, %s2845_s30 }
  0x89   : > { %640 = vrot.lane.b32.xlu1 %v3250_v12, %s2845_s30  ;;  %646 = vrot.lane.b32.xlu0 %v3254_v13, %s2845_s30 }
  0x8d   : > { %644 = vrot.lane.b32.xlu1 %v3258_v15, %s2845_s30  ;;  %650 = vrot.lane.b32.xlu0 %v3262_v16, %s2845_s30 }
  0x90   : > { %v430_v35 = vpop.permute.xlu0 %429 }
  0x91   : > { %648 = vrot.lane.b32.xlu1 %v3266_v17, %s2845_s30  ;;  %654 = vrot.lane.b32.xlu0 %v3270_v18, %s2845_s30  ;;  %526 = vst.msk [vmem:[#allocation3] sm:$0xff] %vm525_vm2, %v430_v35 }
  0x95   : > { %652 = vrot.lane.b32.xlu1 %v3274_v19, %s2845_s30  ;;  %658 = vrot.lane.b32.xlu0 %v576_v20, %s2845_s30  ;;  %v585_v20 = vld [vmem:[#allocation2 + $0x142] sm:$0xff] }
  0x99   : > { %656 = vrot.lane.b32.xlu1 %v3280_v21, %s2845_s30  ;;  %662 = vrot.lane.b32.xlu0 %v578_v22, %s2845_s30 }
  0x9d   : > { %660 = vrot.lane.b32.xlu1 %v577_v23, %s2845_s30  ;;  %666 = vrot.lane.b32.xlu0 %v580_v24, %s2845_s30  ;;  %v588_v23 = vld [vmem:[#allocation2 + $0x16a] sm:$0xff] }
  0xa1   : > { %664 = vrot.lane.b32.xlu1 %v579_v28, %s2845_s30  ;;  %670 = vrot.lane.b32.xlu0 %v582_v29, %s2845_s30  ;;  %v587_v28 = vld [vmem:[#allocation2 + $0x15a] sm:$0xff] }
  0xa2   : > { %v432_v44 = vpop.permute.xlu0 %431 }
  0xa3   : > { %527 = vst.msk [vmem:[#allocation3 + $0x8] sm:$0xff] %vm525_vm2, %v432_v44 }
  0xa5   : > { %668 = vrot.lane.b32.xlu1 %v581_v33, %s2845_s30  ;;  %674 = vrot.lane.b32.xlu0 %v584_v34, %s2845_s30  ;;  %v589_v34 = vld [vmem:[#allocation2 + $0x172] sm:$0xff] }
  0xa9   : > { %672 = vrot.lane.b32.xlu1 %v583_v36, %s2845_s30  ;;  %678 = vrot.lane.b32.xlu0 %v586_v37, %s2845_s30 }
  0xab   : > { %v434_v22 = vpop.permute.xlu1 %433  ;;  %v438_v24 = vpop.permute.xlu0 %437 }
  0xac   : > { %528 = vst.msk [vmem:[#allocation3 + $0x10] sm:$0xff] %vm525_vm2, %v434_v22  ;;  %530 = vst.msk [vmem:[#allocation3 + $0x20] sm:$0xff] %vm525_vm2, %v438_v24 }
  0xad   : > { %676 = vrot.lane.b32.xlu1 %v585_v20, %s2845_s30  ;;  %682 = vrot.lane.b32.xlu0 %v588_v23, %s2845_s30 }
  0xaf   : > { %v436_v29 = vpop.permute.xlu1 %435  ;;  %v442_v33 = vpop.permute.xlu0 %441 }
  0xb0   : > { %529 = vst.msk [vmem:[#allocation3 + $0x18] sm:$0xff] %vm525_vm2, %v436_v29  ;;  %532 = vst.msk [vmem:[#allocation3 + $0x30] sm:$0xff] %vm525_vm2, %v442_v33 }
  0xb1   : > { %680 = vrot.lane.b32.xlu1 %v587_v28, %s2845_s30  ;;  %815 = vrot.lane.b32.xlu0 %v3096_v48, %s2846_s4 }
  0xb3   : > { %v440_v35 = vpop.permute.xlu1 %439  ;;  %v446_v36 = vpop.permute.xlu0 %445 }
  0xb4   : > { %531 = vst.msk [vmem:[#allocation3 + $0x28] sm:$0xff] %vm525_vm2, %v440_v35  ;;  %534 = vst.msk [vmem:[#allocation3 + $0x40] sm:$0xff] %vm525_vm2, %v446_v36 }
  0xb5   : > { %684 = vrot.lane.b32.xlu1 %v589_v34, %s2845_s30  ;;  %819 = vrot.lane.b32.xlu0 %v3101_v49, %s2846_s4 }
  0xb7   : > { %v444_v37 = vpop.permute.xlu1 %443  ;;  %v450_v44 = vpop.permute.xlu0 %449 }
  0xb8   : > { %533 = vst.msk [vmem:[#allocation3 + $0x38] sm:$0xff] %vm525_vm2, %v444_v37  ;;  %536 = vst.msk [vmem:[#allocation3 + $0x50] sm:$0xff] %vm525_vm2, %v450_v44 }
  0xb9   : > { %817 = vrot.lane.b32.xlu1 %v3105_v51, %s2846_s4  ;;  %823 = vrot.lane.b32.xlu0 %v3107_v52, %s2846_s4 }
  0xbb   : > { %v448_v48 = vpop.permute.xlu1 %447  ;;  %v454_v20 = vpop.permute.xlu0 %453 }
  0xbc   : > { %535 = vst.msk [vmem:[#allocation3 + $0x48] sm:$0xff] %vm525_vm2, %v448_v48  ;;  %538 = vst.msk [vmem:[#allocation3 + $0x60] sm:$0xff] %vm525_vm2, %v454_v20 }
  0xbd   : > { %821 = vrot.lane.b32.xlu1 %v3115_v54, %s2846_s4  ;;  %827 = vrot.lane.b32.xlu0 %v3117_v55, %s2846_s4 }
  0xbf   : > { %v452_v22 = vpop.permute.xlu1 %451  ;;  %v458_v51 = vpop.permute.xlu0 %457 }
  0xc0   : > { %537 = vst.msk [vmem:[#allocation3 + $0x58] sm:$0xff] %vm525_vm2, %v452_v22  ;;  %540 = vst.msk [vmem:[#allocation3 + $0x70] sm:$0xff] %vm525_vm2, %v458_v51 }
  0xc1   : > { %825 = vrot.lane.b32.xlu1 %v3123_v57, %s2846_s4  ;;  %831 = vrot.lane.b32.xlu0 %v3125_v58, %s2846_s4 }
  0xc3   : > { %v456_v23 = vpop.permute.xlu1 %455  ;;  %v462_v24 = vpop.permute.xlu0 %461 }
  0xc4   : > { %539 = vst.msk [vmem:[#allocation3 + $0x68] sm:$0xff] %vm525_vm2, %v456_v23  ;;  %542 = vst.msk [vmem:[#allocation3 + $0x80] sm:$0xff] %vm525_vm2, %v462_v24 }
  0xc5   : > { %829 = vrot.lane.b32.xlu1 %v3127_v59, %s2846_s4  ;;  %835 = vrot.lane.b32.xlu0 %v3136_v60, %s2846_s4 }
  0xc7   : > { %v460_v28 = vpop.permute.xlu1 %459  ;;  %v466_v29 = vpop.permute.xlu0 %465 }
  0xc8   : > { %541 = vst.msk [vmem:[#allocation3 + $0x78] sm:$0xff] %vm525_vm2, %v460_v28  ;;  %544 = vst.msk [vmem:[#allocation3 + $0x90] sm:$0xff] %vm525_vm2, %v466_v29  ;;  %v1944_v28 = vld [vmem:[%s4007_s1 + $0x10] sm:$0xff] }
  0xc9   : > { %833 = vrot.lane.b32.xlu1 %v3138_v61, %s2846_s4  ;;  %839 = vrot.lane.b32.xlu0 %v3140_v62, %s2846_s4 }
  0xcb   : > { %v464_v33 = vpop.permute.xlu1 %463  ;;  %v470_v34 = vpop.permute.xlu0 %469 }
  0xcc   : > { %543 = vst.msk [vmem:[#allocation3 + $0x88] sm:$0xff] %vm525_vm2, %v464_v33  ;;  %546 = vst.msk [vmem:[#allocation3 + $0xa0] sm:$0xff] %vm525_vm2, %v470_v34  ;;  %v1943_v33 = vld [vmem:[%s4007_s1 + $0x8] sm:$0xff]  ;;  %v1942_v34 = vld [vmem:[%s4007_s1] sm:$0xff] }
  0xcd   : > { %837 = vrot.lane.b32.xlu1 %v3148_v0, %s2846_s4  ;;  %843 = vrot.lane.b32.xlu0 %v3150_v1, %s2846_s4 }
  0xcf   : > { %v468_v35 = vpop.permute.xlu1 %467  ;;  %v474_v36 = vpop.permute.xlu0 %473 }
  0xd0   : > { %545 = vst.msk [vmem:[#allocation3 + $0x98] sm:$0xff] %vm525_vm2, %v468_v35  ;;  %548 = vst.msk [vmem:[#allocation3 + $0xb0] sm:$0xff] %vm525_vm2, %v474_v36 }
  0xd1   : > { %841 = vrot.lane.b32.xlu1 %v3152_v2, %s2846_s4  ;;  %847 = vrot.lane.b32.xlu0 %v3161_v3, %s2846_s4 }
  0xd3   : > { %v472_v37 = vpop.permute.xlu1 %471  ;;  %v478_v44 = vpop.permute.xlu0 %477 }
  0xd4   : > { %547 = vst.msk [vmem:[#allocation3 + $0xa8] sm:$0xff] %vm525_vm2, %v472_v37  ;;  %550 = vst.msk [vmem:[#allocation3 + $0xc0] sm:$0xff] %vm525_vm2, %v478_v44 }
  0xd5   : > { %845 = vrot.lane.b32.xlu1 %v3163_v4, %s2846_s4  ;;  %851 = vrot.lane.b32.xlu0 %v3165_v5, %s2846_s4 }
  0xd7   : > { %v476_v48 = vpop.permute.xlu1 %475  ;;  %v482_v20 = vpop.permute.xlu0 %481 }
  0xd8   : > { %549 = vst.msk [vmem:[#allocation3 + $0xb8] sm:$0xff] %vm525_vm2, %v476_v48  ;;  %552 = vst.msk [vmem:[#allocation3 + $0xd0] sm:$0xff] %vm525_vm2, %v482_v20 }
  0xd9   : > { %849 = vrot.lane.b32.xlu1 %v3173_v6, %s2846_s4  ;;  %1010 = vrot.lane.b32.xlu0 %v3038_v27, %s2847_s5 }
  0xdb   : > { %v480_v22 = vpop.permute.xlu1 %479  ;;  %v486_v51 = vpop.permute.xlu0 %485 }
  0xdc   : > { %551 = vst.msk [vmem:[#allocation3 + $0xc8] sm:$0xff] %vm525_vm2, %v480_v22  ;;  %554 = vst.msk [vmem:[#allocation3 + $0xe0] sm:$0xff] %vm525_vm2, %v486_v51 }
  0xdd   : > { %1008 = vrot.lane.b32.xlu1 %v3029_v25, %s2847_s5  ;;  %1203 = vrot.lane.b32.xlu0 %v3226_v46, %s2848_s6  ;;  %v1946_v46 = vld [vmem:[%s4007_s1 + $0x20] sm:$0xf] }
  0xde   : > { %2629 = vmatprep.subr.msk.mxu0 %vm2044_vm4, %v1946_v46  ;;  %2687 = vmatprep.subr.msk.mxu1 %vm2044_vm4, %v1946_v46 }
  0xdf   : > { %v484_v23 = vpop.permute.xlu1 %483  ;;  %v490_v24 = vpop.permute.xlu0 %489  ;;  %2630 = vmatpush3.msk.msra.mxu0 %vm2044_vm4, %v1946_v46  ;;  %2692 = vmatpush3.msk.msra.mxu1 %vm2044_vm4, %v1946_v46 }
  0xe0   : > { %553 = vst.msk [vmem:[#allocation3 + $0xd8] sm:$0xff] %vm525_vm2, %v484_v23  ;;  %556 = vst.msk [vmem:[#allocation3 + $0xf0] sm:$0xff] %vm525_vm2, %v490_v24 }
  0xe1   : > { %1201 = vrot.lane.b32.xlu1 %v3218_v39, %s2848_s6  ;;  %1397 = vrot.lane.b32.xlu0 %v3115_v54, %s2849_s7  ;;  %v1945_v39 = vld [vmem:[%s4007_s1 + $0x18] sm:$0xff] }
  0xe2   : > { %2631 = vmatprep.subr.mxu0 %v1945_v39  ;;  %2688 = vmatprep.subr.mxu1 %v1945_v39 }
  0xe3   : > { %v488_v25 = vpop.permute.xlu1 %487  ;;  %v623_v27 = vpop.permute.xlu0 %622  ;;  %2632 = vmatpush3.msra.mxu0 %v1945_v39  ;;  %2693 = vmatpush3.msra.mxu1 %v1945_v39 }
  0xe4   : > { %555 = vst.msk [vmem:[#allocation3 + $0xe8] sm:$0xff] %vm525_vm2, %v488_v25  ;;  %2633 = vmatprep.subr.mxu0 %v1944_v28  ;;  %2689 = vmatprep.subr.mxu1 %v1944_v28 }
  0xe5   : > { %1395 = vrot.lane.b32.xlu1 %v3101_v49, %s2849_s7  ;;  %719 = vst.msk [vmem:[#allocation3] sm:$0xff] %vm718_vm3, %v623_v27  ;;  %1012 = vrot.lane.b32.xlu0 %v3031_v26, %s2847_s5 }
  0xe6   : > { %2634 = vmatpush3.msra.mxu0 %v1944_v28  ;;  %2694 = vmatpush3.msra.mxu1 %v1944_v28 }
  0xe7   : > { %v492_v54 = vpop.permute.xlu1 %491  ;;  %v627_v49 = vpop.permute.xlu0 %626  ;;  %2635 = vmatprep.subr.mxu0 %v1943_v33  ;;  %2690 = vmatprep.subr.mxu1 %v1943_v33 }
  0xe8   : > { %557 = vst.msk [vmem:[#allocation3 + $0xf8] sm:$0xff] %vm525_vm2, %v492_v54  ;;  %2636 = vmatpush3.msra.mxu0 %v1943_v33  ;;  %2695 = vmatpush3.msra.mxu1 %v1943_v33 }
  0xe9   : > { %1588 = vrot.lane.b32.xlu1 %v3031_v26, %s2850_s17  ;;  %721 = vst.msk [vmem:[#allocation3 + $0x10] sm:$0xff] %vm718_vm3, %v627_v49  ;;  %1781 = vrot.lane.b32.xlu0 %v3223_v45, %s2851_s24 }
  0xea   : > { %2637 = vmatprep.subr.mxu0 %v1942_v34  ;;  %2691 = vmatprep.subr.mxu1 %v1942_v34 }
  0xeb   : > { %v625_v29 = vpop.permute.xlu1 %624  ;;  %v631_v26 = vpop.permute.xlu0 %630  ;;  %2638 = vmatpush3.msra.mxu0 %v1942_v34  ;;  %2696 = vmatpush3.msra.mxu1 %v1942_v34 }
  0xec   : > { %720 = vst.msk [vmem:[#allocation3 + $0x8] sm:$0xff] %vm718_vm3, %v625_v29  ;;  %723 = vst.msk [vmem:[#allocation3 + $0x20] sm:$0xff] %vm718_vm3, %v631_v26 }
  0xed   : > { %1590 = vrot.lane.b32.xlu1 %v3050_v31, %s2850_s17  ;;  %1205 = vrot.lane.b32.xlu0 %v3223_v45, %s2848_s6 }
  0xef   : > { %v629_v35 = vpop.permute.xlu1 %628  ;;  %v635_v36 = vpop.permute.xlu0 %634 }
  0xf0   : > { %722 = vst.msk [vmem:[#allocation3 + $0x18] sm:$0xff] %vm718_vm3, %v629_v35  ;;  %725 = vst.msk [vmem:[#allocation3 + $0x30] sm:$0xff] %vm718_vm3, %v635_v36 }
  0xf1   : > { %1014 = vrot.lane.b32.xlu1 %v3050_v31, %s2847_s5  ;;  %1207 = vrot.lane.b32.xlu0 %v3234_v53, %s2848_s6 }
  0xf3   : > { %v633_v37 = vpop.permute.xlu1 %632  ;;  %v639_v45 = vpop.permute.xlu0 %638 }
  0xf4   : > { %724 = vst.msk [vmem:[#allocation3 + $0x28] sm:$0xff] %vm718_vm3, %v633_v37  ;;  %727 = vst.msk [vmem:[#allocation3 + $0x40] sm:$0xff] %vm718_vm3, %v639_v45 }
  0xf5   : > { %1783 = vrot.lane.b32.xlu1 %v3234_v53, %s2851_s24  ;;  %1401 = vrot.lane.b32.xlu0 %v3123_v57, %s2849_s7 }
  0xf7   : > { %v637_v31 = vpop.permute.xlu1 %636  ;;  %v643_v44 = vpop.permute.xlu0 %642 }
  0xf8   : > { %726 = vst.msk [vmem:[#allocation3 + $0x38] sm:$0xff] %vm718_vm3, %v637_v31  ;;  %729 = vst.msk [vmem:[#allocation3 + $0x50] sm:$0xff] %vm718_vm3, %v643_v44 }
  0xf9   : > { %1399 = vrot.lane.b32.xlu1 %v3107_v52, %s2849_s7  ;;  %1016 = vrot.lane.b32.xlu0 %v3046_v30, %s2847_s5 }
  0xfb   : > { %v641_v48 = vpop.permute.xlu1 %640  ;;  %v647_v53 = vpop.permute.xlu0 %646 }
  0xfc   : > { %728 = vst.msk [vmem:[#allocation3 + $0x48] sm:$0xff] %vm718_vm3, %v641_v48  ;;  %731 = vst.msk [vmem:[#allocation3 + $0x60] sm:$0xff] %vm718_vm3, %v647_v53  ;;  %v958_v48 = vld [vmem:[#allocation2 + $0xc1] sm:$0xff] }
  0xfd   : > { %1592 = vrot.lane.b32.xlu1 %v3046_v30, %s2850_s17  ;;  %1785 = vrot.lane.b32.xlu0 %v3230_v50, %s2851_s24 }
  0xff   : > { %v645_v57 = vpop.permute.xlu1 %644  ;;  %v651_v52 = vpop.permute.xlu0 %650 }
 0x100   : > { %730 = vst.msk [vmem:[#allocation3 + $0x58] sm:$0xff] %vm718_vm3, %v645_v57  ;;  %733 = vst.msk [vmem:[#allocation3 + $0x70] sm:$0xff] %vm718_vm3, %v651_v52 }
 0x101   : > { %1594 = vrot.lane.b32.xlu1 %v3066_v38, %s2850_s17  ;;  %1209 = vrot.lane.b32.xlu0 %v3230_v50, %s2848_s6 }
 0x103   : > { %v649_v20 = vpop.permute.xlu1 %648  ;;  %v655_v30 = vpop.permute.xlu0 %654 }
 0x104   : > { %732 = vst.msk [vmem:[#allocation3 + $0x68] sm:$0xff] %vm718_vm3, %v649_v20  ;;  %735 = vst.msk [vmem:[#allocation3 + $0x80] sm:$0xff] %vm718_vm3, %v655_v30 }
 0x105   : > { %1018 = vrot.lane.b32.xlu1 %v3066_v38, %s2847_s5  ;;  %1211 = vrot.lane.b32.xlu0 %v3242_v63, %s2848_s6 }
 0x107   : > { %v653_v22 = vpop.permute.xlu1 %652  ;;  %v659_v51 = vpop.permute.xlu0 %658 }
 0x108   : > { %734 = vst.msk [vmem:[#allocation3 + $0x78] sm:$0xff] %vm718_vm3, %v653_v22  ;;  %737 = vst.msk [vmem:[#allocation3 + $0x90] sm:$0xff] %vm718_vm3, %v659_v51 }
 0x109   : > { %1787 = vrot.lane.b32.xlu1 %v3242_v63, %s2851_s24  ;;  %1405 = vrot.lane.b32.xlu0 %v3127_v59, %s2849_s7 }
 0x10b   : > { %v657_v50 = vpop.permute.xlu1 %656  ;;  %v663_v38 = vpop.permute.xlu0 %662 }
 0x10c   : > { %736 = vst.msk [vmem:[#allocation3 + $0x88] sm:$0xff] %vm718_vm3, %v657_v50  ;;  %739 = vst.msk [vmem:[#allocation3 + $0xa0] sm:$0xff] %vm718_vm3, %v663_v38 }
 0x10d   : > { %1403 = vrot.lane.b32.xlu1 %v3117_v55, %s2849_s7  ;;  %1020 = vrot.lane.b32.xlu0 %v3054_v32, %s2847_s5 }
 0x10f   : > { %v661_v23 = vpop.permute.xlu1 %660  ;;  %v667_v63 = vpop.permute.xlu0 %666 }
 0x110   : > { %738 = vst.msk [vmem:[#allocation3 + $0x98] sm:$0xff] %vm718_vm3, %v661_v23  ;;  %741 = vst.msk [vmem:[#allocation3 + $0xb0] sm:$0xff] %vm718_vm3, %v667_v63  ;;  %v960_v23 = vld [vmem:[#allocation2 + $0xd9] sm:$0xff] }
 0x111   : > { %1596 = vrot.lane.b32.xlu1 %v3054_v32, %s2850_s17  ;;  %1789 = vrot.lane.b32.xlu0 %v3238_v56, %s2851_s24 }
 0x113   : > { %v665_v59 = vpop.permute.xlu1 %664  ;;  %v671_v55 = vpop.permute.xlu0 %670 }
 0x114   : > { %740 = vst.msk [vmem:[#allocation3 + $0xa8] sm:$0xff] %vm718_vm3, %v665_v59  ;;  %743 = vst.msk [vmem:[#allocation3 + $0xc0] sm:$0xff] %vm718_vm3, %v671_v55  ;;  %v1731_v59 = vld [vmem:[#allocation2 + $0xda] sm:$0xff] }
 0x115   : > { %1598 = vrot.lane.b32.xlu1 %v3078_v41, %s2850_s17  ;;  %1213 = vrot.lane.b32.xlu0 %v3238_v56, %s2848_s6  ;;  %v1539_v55 = vld [vmem:[#allocation2 + $0xe1] sm:$0xff] }
 0x117   : > { %v669_v24 = vpop.permute.xlu1 %668  ;;  %v675_v32 = vpop.permute.xlu0 %674 }
 0x118   : > { %742 = vst.msk [vmem:[#allocation3 + $0xb8] sm:$0xff] %vm718_vm3, %v669_v24  ;;  %745 = vst.msk [vmem:[#allocation3 + $0xd0] sm:$0xff] %vm718_vm3, %v675_v32 }
 0x119   : > { %1022 = vrot.lane.b32.xlu1 %v3078_v41, %s2847_s5  ;;  %1215 = vrot.lane.b32.xlu0 %v3250_v12, %s2848_s6 }
 0x11b   : > { %v673_v25 = vpop.permute.xlu1 %672  ;;  %v679_v27 = vpop.permute.xlu0 %678 }
 0x11c   : > { %744 = vst.msk [vmem:[#allocation3 + $0xc8] sm:$0xff] %vm718_vm3, %v673_v25  ;;  %747 = vst.msk [vmem:[#allocation3 + $0xe0] sm:$0xff] %vm718_vm3, %v679_v27  ;;  %v1154_v27 = vld [vmem:[#allocation2 + $0xe2] sm:$0xff] }
 0x11d   : > { %1791 = vrot.lane.b32.xlu1 %v3250_v12, %s2851_s24  ;;  %1409 = vrot.lane.b32.xlu0 %v3138_v61, %s2849_s7 }
 0x11f   : > { %v677_v56 = vpop.permute.xlu1 %676  ;;  %v683_v41 = vpop.permute.xlu0 %682 }
 0x120   : > { %746 = vst.msk [vmem:[#allocation3 + $0xd8] sm:$0xff] %vm718_vm3, %v677_v56  ;;  %749 = vst.msk [vmem:[#allocation3 + $0xf0] sm:$0xff] %vm718_vm3, %v683_v41 }
 0x121   : > { %1407 = vrot.lane.b32.xlu1 %v3125_v58, %s2849_s7  ;;  %1024 = vrot.lane.b32.xlu0 %v3074_v40, %s2847_s5 }
 0x123   : > { %v681_v46 = vpop.permute.xlu1 %680  ;;  %v816_v12 = vpop.permute.xlu0 %815 }
 0x124   : > { %748 = vst.msk [vmem:[#allocation3 + $0xe8] sm:$0xff] %vm718_vm3, %v681_v46 }
 0x125   : > { %1600 = vrot.lane.b32.xlu1 %v3074_v40, %s2850_s17  ;;  %912 = vst.msk [vmem:[#allocation3] sm:$0xff] %vm911_vm5, %v816_v12  ;;  %1793 = vrot.lane.b32.xlu0 %v3246_v11, %s2851_s24 }
 0x127   : > { %v685_v61 = vpop.permute.xlu1 %684  ;;  %v820_v58 = vpop.permute.xlu0 %819 }
 0x128   : > { %750 = vst.msk [vmem:[#allocation3 + $0xf8] sm:$0xff] %vm718_vm3, %v685_v61 }
 0x129   : > { %1602 = vrot.lane.b32.xlu1 %v3086_v43, %s2850_s17  ;;  %914 = vst.msk [vmem:[#allocation3 + $0x10] sm:$0xff] %vm911_vm5, %v820_v58  ;;  %1217 = vrot.lane.b32.xlu0 %v3246_v11, %s2848_s6 }
 0x12b   : > { %v818_v54 = vpop.permute.xlu1 %817  ;;  %v824_v40 = vpop.permute.xlu0 %823 }
 0x12c   : > { %913 = vst.msk [vmem:[#allocation3 + $0x8] sm:$0xff] %vm911_vm5, %v818_v54  ;;  %916 = vst.msk [vmem:[#allocation3 + $0x20] sm:$0xff] %vm911_vm5, %v824_v40  ;;  %v1540_v54 = vld [vmem:[#allocation2 + $0xf1] sm:$0xff] }
 0x12d   : > { %1026 = vrot.lane.b32.xlu1 %v3086_v43, %s2847_s5  ;;  %1219 = vrot.lane.b32.xlu0 %v3258_v15, %s2848_s6  ;;  %v210_v40 = vld [vmem:[%s2984_s28 + $0xf0] sm:$0xff] }
 0x12e   : > { %299 = vst.msk [vmem:[#allocation2 + $0x181] sm:$0xff] %vm212_vm0, %v210_v40 }
 0x12f   : > { %v822_v39 = vpop.permute.xlu1 %821  ;;  %v828_v49 = vpop.permute.xlu0 %827 }
 0x130   : > { %915 = vst.msk [vmem:[#allocation3 + $0x18] sm:$0xff] %vm911_vm5, %v822_v39  ;;  %918 = vst.msk [vmem:[#allocation3 + $0x30] sm:$0xff] %vm911_vm5, %v828_v49  ;;  %v1541_v49 = vld [vmem:[#allocation2 + $0xf9] sm:$0xff] }
 0x131   : > { %1795 = vrot.lane.b32.xlu1 %v3258_v15, %s2851_s24  ;;  %1413 = vrot.lane.b32.xlu0 %v3148_v0, %s2849_s7 }
 0x133   : > { %v826_v11 = vpop.permute.xlu1 %825  ;;  %v832_v43 = vpop.permute.xlu0 %831 }
 0x134   : > { %917 = vst.msk [vmem:[#allocation3 + $0x28] sm:$0xff] %vm911_vm5, %v826_v11  ;;  %920 = vst.msk [vmem:[#allocation3 + $0x40] sm:$0xff] %vm911_vm5, %v832_v43  ;;  %v211_v43 = vld [vmem:[%s2984_s28 + $0xf8] sm:$0xff]  ;;  %s3814_s28 = sand.u32 1, %s2833_s13  }
 0x135   : > { %1411 = vrot.lane.b32.xlu1 %v3136_v60, %s2849_s7  ;;  %1028 = vrot.lane.b32.xlu0 %v3082_v42, %s2847_s5  ;;  %300 = vst.msk [vmem:[#allocation2 + $0x189] sm:$0xff] %vm212_vm0, %v211_v43  ;;  %v1740_v43 = vld [vmem:[#allocation2 + $0x142] sm:$0xff]  ;;  %s2417_s11 = scalar_lea.sflag [#allocation5], %s3814_s28 }
 0x137   : > { %v830_v28 = vpop.permute.xlu1 %829  ;;  %v836_v15 = vpop.permute.xlu0 %835 }
 0x138   : > { %919 = vst.msk [vmem:[#allocation3 + $0x38] sm:$0xff] %vm911_vm5, %v830_v28  ;;  %922 = vst.msk [vmem:[#allocation3 + $0x50] sm:$0xff] %vm911_vm5, %v836_v15  ;;  %v1733_v15 = vld [vmem:[#allocation2 + $0xf2] sm:$0xff] }
 0x139   : > { %1604 = vrot.lane.b32.xlu1 %v3082_v42, %s2850_s17  ;;  %1797 = vrot.lane.b32.xlu0 %v3254_v13, %s2851_s24 }
 0x13b   : > { %v834_v0 = vpop.permute.xlu1 %833  ;;  %v840_v60 = vpop.permute.xlu0 %839 }
 0x13c   : > { %921 = vst.msk [vmem:[#allocation3 + $0x48] sm:$0xff] %vm911_vm5, %v834_v0  ;;  %924 = vst.msk [vmem:[#allocation3 + $0x60] sm:$0xff] %vm911_vm5, %v840_v60  ;;  %v1734_v60 = vld [vmem:[#allocation2 + $0xfa] sm:$0xff] }
 0x13d   : > { %1606 = vrot.lane.b32.xlu1 %v3093_v47, %s2850_s17  ;;  %1221 = vrot.lane.b32.xlu0 %v3254_v13, %s2848_s6 }
 0x13f   : > { %v838_v29 = vpop.permute.xlu1 %837  ;;  %v844_v42 = vpop.permute.xlu0 %843 }
 0x140   : > { %923 = vst.msk [vmem:[#allocation3 + $0x58] sm:$0xff] %vm911_vm5, %v838_v29  ;;  %926 = vst.msk [vmem:[#allocation3 + $0x70] sm:$0xff] %vm911_vm5, %v844_v42 }
 0x141   : > { %1030 = vrot.lane.b32.xlu1 %v3093_v47, %s2847_s5  ;;  %1223 = vrot.lane.b32.xlu0 %v3266_v17, %s2848_s6  ;;  %v956_v47 = vld [vmem:[#allocation2 + $0xa9] sm:$0xff] }
 0x143   : > { %v842_v33 = vpop.permute.xlu1 %841  ;;  %v848_v26 = vpop.permute.xlu0 %847 }
 0x144   : > { %925 = vst.msk [vmem:[#allocation3 + $0x68] sm:$0xff] %vm911_vm5, %v842_v33  ;;  %928 = vst.msk [vmem:[#allocation3 + $0x80] sm:$0xff] %vm911_vm5, %v848_v26 }
 0x145   : > { %1799 = vrot.lane.b32.xlu1 %v3266_v17, %s2851_s24  ;;  %1417 = vrot.lane.b32.xlu0 %v3152_v2, %s2849_s7  ;;  %v1535_v2 = vld [vmem:[#allocation2 + $0xb1] sm:$0xff] }
 0x147   : > { %v846_v13 = vpop.permute.xlu1 %845  ;;  %v852_v34 = vpop.permute.xlu0 %851 }
 0x148   : > { %927 = vst.msk [vmem:[#allocation3 + $0x78] sm:$0xff] %vm911_vm5, %v846_v13  ;;  %930 = vst.msk [vmem:[#allocation3 + $0x90] sm:$0xff] %vm911_vm5, %v852_v34 }
 0x149   : > { %1415 = vrot.lane.b32.xlu1 %v3140_v62, %s2849_s7  ;;  %1032 = vrot.lane.b32.xlu0 %v956_v47, %s2847_s5 }
 0x14b   : > { %v850_v35 = vpop.permute.xlu1 %849  ;;  %v1011_v17 = vpop.permute.xlu0 %1010 }
 0x14c   : > { %929 = vst.msk [vmem:[#allocation3 + $0x88] sm:$0xff] %vm911_vm5, %v850_v35 }
 0x14d   : > { %1608 = vrot.lane.b32.xlu1 %v956_v47, %s2850_s17  ;;  %1106 = vst.msk [vmem:[#allocation3 + $0x8] sm:$0xff] %vm1104_vm6, %v1011_v17  ;;  %1801 = vrot.lane.b32.xlu0 %v3262_v16, %s2851_s24  ;;  %v1542_v17 = vld [vmem:[#allocation2 + $0x109] sm:$0xff] }
 0x14f   : > { %v1009_v36 = vpop.permute.xlu1 %1008  ;;  %v1204_v62 = vpop.permute.xlu0 %1203 }
 0x150   : > { %1105 = vst.msk [vmem:[#allocation3] sm:$0xff] %vm1104_vm6, %v1009_v36  ;;  %v1543_v36 = vld [vmem:[#allocation2 + $0x111] sm:$0xff] }
 0x151   : > { %1610 = vrot.lane.b32.xlu1 %v1535_v2, %s2850_s17  ;;  %1299 = vst.msk [vmem:[#allocation3 + $0x8] sm:$0xff] %vm1297_vm7, %v1204_v62  ;;  %1225 = vrot.lane.b32.xlu0 %v3262_v16, %s2848_s6 }
 0x153   : > { %v1202_v37 = vpop.permute.xlu1 %1201  ;;  %v1398_v45 = vpop.permute.xlu0 %1397 }
 0x154   : > { %1298 = vst.msk [vmem:[#allocation3] sm:$0xff] %vm1297_vm7, %v1202_v37 }
 0x155   : > { %1034 = vrot.lane.b32.xlu1 %v1535_v2, %s2847_s5  ;;  %1493 = vst.msk [vmem:[#allocation3 + $0x8] sm:$0xff] %vm1491_vm8, %v1398_v45  ;;  %1227 = vrot.lane.b32.xlu0 %v3274_v19, %s2848_s6 }
 0x157   : > { %v1396_v31 = vpop.permute.xlu1 %1395  ;;  %v1013_v44 = vpop.permute.xlu0 %1012 }
 0x158   : > { %1492 = vst.msk [vmem:[#allocation3] sm:$0xff] %vm1491_vm8, %v1396_v31 }
 0x159   : > { %1803 = vrot.lane.b32.xlu1 %v3274_v19, %s2851_s24  ;;  %1107 = vst.msk [vmem:[#allocation3 + $0x10] sm:$0xff] %vm1104_vm6, %v1013_v44  ;;  %1421 = vrot.lane.b32.xlu0 %v3163_v4, %s2849_s7  ;;  %v1537_v4 = vld [vmem:[#allocation2 + $0xc9] sm:$0xff]  ;;  %v1736_v44 = vld [vmem:[#allocation2 + $0x112] sm:$0xff] }
 0x15b   : > { %v1589_v16 = vpop.permute.xlu1 %1588  ;;  %v1782_v53 = vpop.permute.xlu0 %1781 }
 0x15c   : > { %1685 = vst.msk [vmem:[#allocation3] sm:$0xff] %vm1684_vm9, %v1589_v16 }
 0x15d   : > { %1419 = vrot.lane.b32.xlu1 %v3150_v1, %s2849_s7  ;;  %1878 = vst.msk [vmem:[#allocation3] sm:$0xff] %vm1877_vm10, %v1782_v53  ;;  %1036 = vrot.lane.b32.xlu0 %v958_v48, %s2847_s5 }
 0x15f   : > { %v1591_v19 = vpop.permute.xlu1 %1590  ;;  %v1206_v57 = vpop.permute.xlu0 %1205 }
 0x160   : > { %1686 = vst.msk [vmem:[#allocation3 + $0x8] sm:$0xff] %vm1684_vm9, %v1591_v19 }
 0x161   : > { %1612 = vrot.lane.b32.xlu1 %v958_v48, %s2850_s17  ;;  %1300 = vst.msk [vmem:[#allocation3 + $0x10] sm:$0xff] %vm1297_vm7, %v1206_v57  ;;  %1805 = vrot.lane.b32.xlu0 %v3270_v18, %s2851_s24 }
 0x163   : > { %v1015_v52 = vpop.permute.xlu1 %1014  ;;  %v1208_v1 = vpop.permute.xlu0 %1207 }
 0x164   : > { %1108 = vst.msk [vmem:[#allocation3 + $0x18] sm:$0xff] %vm1104_vm6, %v1015_v52  ;;  %v1910_v20 = vld [vmem:[#allocation3] sm:$0xff]  ;;  %v773_v52 = vld [vmem:[#allocation2 + $0x120] sm:$0xff] }
 0x165   : > { %1614 = vrot.lane.b32.xlu1 %v1537_v4, %s2850_s17  ;;  %1301 = vst.msk [vmem:[#allocation3 + $0x18] sm:$0xff] %vm1297_vm7, %v1208_v1  ;;  %2639 = vmatprep.mubr.msk.f32.mxu0 %vm1947_vm11, %v1910_v20 }
 0x166   : > { %1229 = vrot.lane.b32.xlu0 %v3270_v18, %s2848_s6 }
 0x167   : > { %v1784_v30 = vpop.permute.xlu1 %1783  ;;  %v1402_v22 = vpop.permute.xlu0 %1401 }
 0x168   : > { %1879 = vst.msk [vmem:[#allocation3 + $0x8] sm:$0xff] %vm1877_vm10, %v1784_v30 }
 0x169   : > { %1038 = vrot.lane.b32.xlu1 %v1537_v4, %s2847_s5  ;;  %1495 = vst.msk [vmem:[#allocation3 + $0x18] sm:$0xff] %vm1491_vm8, %v1402_v22 }
 0x16a   : > { %1231 = vrot.lane.b32.xlu0 %v3280_v21, %s2848_s6 }
 0x16b   : > { %v1400_v51 = vpop.permute.xlu1 %1399  ;;  %v1017_v50 = vpop.permute.xlu0 %1016 }
 0x16c   : > { %1494 = vst.msk [vmem:[#allocation3 + $0x10] sm:$0xff] %vm1491_vm8, %v1400_v51  ;;  %v1545_v51 = vld [vmem:[#allocation2 + $0x129] sm:$0xff] }
 0x16d   : > { %1807 = vrot.lane.b32.xlu1 %v3280_v21, %s2851_s24  ;;  %1109 = vst.msk [vmem:[#allocation3 + $0x20] sm:$0xff] %vm1104_vm6, %v1017_v50 }
 0x16e   : > { %1425 = vrot.lane.b32.xlu0 %v3173_v6, %s2849_s7 }
 0x16f   : > { %v1593_v18 = vpop.permute.xlu1 %1592  ;;  %v1911_v38 = vld [vmem:[#allocation3 + $0x8] sm:$0xff]  ;;  %v1786_v63 = vpop.permute.xlu0 %1785 }
 0x170   : > { %1687 = vst.msk [vmem:[#allocation3 + $0x10] sm:$0xff] %vm1684_vm9, %v1593_v18  ;;  %2640 = vmatmul.mubr.msk.f32.vlgmr.msra.gmra.mxu0 %vm1947_vm11, %v1911_v38 }
 0x171   : > { %1423 = vrot.lane.b32.xlu1 %v3161_v3, %s2849_s7  ;;  %1880 = vst.msk [vmem:[#allocation3 + $0x10] sm:$0xff] %vm1877_vm10, %v1786_v63 }
 0x172   : > { %1040 = vrot.lane.b32.xlu0 %v960_v23, %s2847_s5 }
 0x173   : > { %v1595_v21 = vpop.permute.xlu1 %1594  ;;  %v1210_v6 = vpop.permute.xlu0 %1209 }
 0x174   : > { %1688 = vst.msk [vmem:[#allocation3 + $0x18] sm:$0xff] %vm1684_vm9, %v1595_v21  ;;  %v1738_v21 = vld [vmem:[#allocation2 + $0x12a] sm:$0xff] }
 0x175   : > { %1616 = vrot.lane.b32.xlu1 %v960_v23, %s2850_s17  ;;  %1302 = vst.msk [vmem:[#allocation3 + $0x20] sm:$0xff] %vm1297_vm7, %v1210_v6 }
 0x176   : > { %1809 = vrot.lane.b32.xlu0 %v1731_v59, %s2851_s24 }
 0x177   : > { %v1019_v24 = vpop.permute.xlu1 %1018  ;;  %v1212_v3 = vpop.permute.xlu0 %1211 }
 0x178   : > { %1110 = vst.msk [vmem:[#allocation3 + $0x28] sm:$0xff] %vm1104_vm6, %v1019_v24  ;;  %v1912_v32 = vld [vmem:[#allocation3 + $0x10] sm:$0xff] }
 0x179   : > { %1618 = vrot.lane.b32.xlu1 %v1539_v55, %s2850_s17  ;;  %1303 = vst.msk [vmem:[#allocation3 + $0x28] sm:$0xff] %vm1297_vm7, %v1212_v3  ;;  %2642 = vmatprep.mubr.msk.f32.mxu0 %vm1947_vm11, %v1912_v32  ;;  %v1354_v32 = vld [vmem:[#allocation2 + $0x140] sm:$0xff] }
 0x17a   : > { %1233 = vrot.lane.b32.xlu0 %v1731_v59, %s2848_s6 }
 0x17b   : > { %v1788_v25 = vpop.permute.xlu1 %1787  ;;  %v1406_v56 = vpop.permute.xlu0 %1405 }
 0x17c   : > { %1881 = vst.msk [vmem:[#allocation3 + $0x18] sm:$0xff] %vm1877_vm10, %v1788_v25 }
 0x17d   : > { %1042 = vrot.lane.b32.xlu1 %v1539_v55, %s2847_s5  ;;  %1497 = vst.msk [vmem:[#allocation3 + $0x28] sm:$0xff] %vm1491_vm8, %v1406_v56  ;;  %v1353_v55 = vld [vmem:[#allocation2 + $0x138] sm:$0xff] }
 0x17e   : > { %1235 = vrot.lane.b32.xlu0 %v1154_v27, %s2848_s6 }
 0x17f   : > { %v1404_v41 = vpop.permute.xlu1 %1403  ;;  %v1021_v46 = vpop.permute.xlu0 %1020 }
 0x180   : > { %1496 = vst.msk [vmem:[#allocation3 + $0x20] sm:$0xff] %vm1491_vm8, %v1404_v41 }
 0x181   : > { %1811 = vrot.lane.b32.xlu1 %v1154_v27, %s2851_s24  ;;  %1111 = vst.msk [vmem:[#allocation3 + $0x30] sm:$0xff] %vm1104_vm6, %v1021_v46  ;;  %v1546_v46 = vld [vmem:[#allocation2 + $0x139] sm:$0xff] }
 0x182   : > { %1429 = vrot.lane.b32.xlu0 %v3177_v8, %s2849_s7 }
 0x183   : > { %v1597_v12 = vpop.permute.xlu1 %1596  ;;  %v1913_v61 = vld [vmem:[#allocation3 + $0x18] sm:$0xff]  ;;  %v1790_v58 = vpop.permute.xlu0 %1789 }
 0x184   : > { %1689 = vst.msk [vmem:[#allocation3 + $0x20] sm:$0xff] %vm1684_vm9, %v1597_v12  ;;  %2643 = vmatmul.mubr.msk.f32.gmra.mxu0 %vm1947_vm11, %v1913_v61  ;;  %v1547_v61 = vld [vmem:[#allocation2 + $0x141] sm:$0xff] }
 0x185   : > { %1427 = vrot.lane.b32.xlu1 %v3165_v5, %s2849_s7  ;;  %1882 = vst.msk [vmem:[#allocation3 + $0x20] sm:$0xff] %vm1877_vm10, %v1790_v58 }
 0x186   : > { %853 = vrot.lane.b32.xlu0 %v3177_v8, %s2846_s4 }
 0x187   : > { %v1599_v39 = vpop.permute.xlu1 %1598  ;;  %v1214_v11 = vpop.permute.xlu0 %1213 }
 0x188   : > { %1690 = vst.msk [vmem:[#allocation3 + $0x28] sm:$0xff] %vm1684_vm9, %v1599_v39 }
 0x189   : > { %1620 = vrot.lane.b32.xlu1 %v1540_v54, %s2850_s17  ;;  %1304 = vst.msk [vmem:[#allocation3 + $0x30] sm:$0xff] %vm1297_vm7, %v1214_v11 }
 0x18a   : > { %1622 = vrot.lane.b32.xlu0 %v1541_v49, %s2850_s17 }
 0x18b   : > { %v1023_v5 = vpop.permute.xlu1 %1022  ;;  %v1216_v8 = vpop.permute.xlu0 %1215 }
 0x18c   : > { %1112 = vst.msk [vmem:[#allocation3 + $0x38] sm:$0xff] %vm1104_vm6, %v1023_v5  ;;  %v1914_v28 = vld [vmem:[#allocation3 + $0x20] sm:$0xff] }
 0x18d   : > { %1044 = vrot.lane.b32.xlu1 %v1540_v54, %s2847_s5  ;;  %1305 = vst.msk [vmem:[#allocation3 + $0x38] sm:$0xff] %vm1297_vm7, %v1216_v8  ;;  %2645 = vmatprep.mubr.msk.f32.mxu0 %vm1947_vm11, %v1914_v28  ;;  %v1355_v28 = vld [vmem:[#allocation2 + $0x150] sm:$0xff] }
 0x18e   : > { %1046 = vrot.lane.b32.xlu0 %v1541_v49, %s2847_s5  ;;  %v1739_v49 = vld [vmem:[#allocation2 + $0x13a] sm:$0xff] }
 0x18f   : > { %v1792_v0 = vpop.permute.xlu1 %1791  ;;  %v1410_v29 = vpop.permute.xlu0 %1409 }
 0x190   : > { %1883 = vst.msk [vmem:[#allocation3 + $0x28] sm:$0xff] %vm1877_vm10, %v1792_v0 }
 0x191   : > { %1813 = vrot.lane.b32.xlu1 %v1733_v15, %s2851_s24  ;;  %1499 = vst.msk [vmem:[#allocation3 + $0x38] sm:$0xff] %vm1491_vm8, %v1410_v29  ;;  %v1356_v29 = vld [vmem:[#allocation2 + $0x158] sm:$0xff] }
 0x192   : > { %1815 = vrot.lane.b32.xlu0 %v1734_v60, %s2851_s24 }
 0x193   : > { %v1408_v42 = vpop.permute.xlu1 %1407  ;;  %v1025_v33 = vpop.permute.xlu0 %1024 }
 0x194   : > { %1498 = vst.msk [vmem:[#allocation3 + $0x30] sm:$0xff] %vm1491_vm8, %v1408_v42 }
 0x195   : > { %1237 = vrot.lane.b32.xlu1 %v1733_v15, %s2848_s6  ;;  %1113 = vst.msk [vmem:[#allocation3 + $0x40] sm:$0xff] %vm1104_vm6, %v1025_v33 }
 0x196   : > { %1431 = vrot.lane.b32.xlu0 %v3175_v7, %s2849_s7 }
 0x197   : > { %v1601_v26 = vpop.permute.xlu1 %1600  ;;  %v1915_v13 = vld [vmem:[#allocation3 + $0x28] sm:$0xff]  ;;  %v1794_v47 = vpop.permute.xlu0 %1793 }
 0x198   : > { %1691 = vst.msk [vmem:[#allocation3 + $0x30] sm:$0xff] %vm1684_vm9, %v1601_v26  ;;  %2646 = vmatmul.mubr.msk.f32.gmra.mxu0 %vm1947_vm11, %v1915_v13  ;;  %v1548_v13 = vld [vmem:[#allocation2 + $0x151] sm:$0xff] }
 0x199   : > { %1239 = vrot.lane.b32.xlu1 %v1734_v60, %s2848_s6  ;;  %1884 = vst.msk [vmem:[#allocation3 + $0x30] sm:$0xff] %vm1877_vm10, %v1794_v47 }
 0x19a   : > { %1433 = vrot.lane.b32.xlu0 %v3188_v10, %s2849_s7 }
 0x19b   : > { %v1603_v34 = vpop.permute.xlu1 %1602  ;;  %v1218_v35 = vpop.permute.xlu0 %1217 }
 0x19c   : > { %1692 = vst.msk [vmem:[#allocation3 + $0x38] sm:$0xff] %vm1684_vm9, %v1603_v34 }
 0x19d   : > { %855 = vrot.lane.b32.xlu1 %v3175_v7, %s2846_s4  ;;  %1306 = vst.msk [vmem:[#allocation3 + $0x40] sm:$0xff] %vm1297_vm7, %v1218_v35  ;;  %v1549_v35 = vld [vmem:[#allocation2 + $0x159] sm:$0xff] }
 0x19e   : > { %857 = vrot.lane.b32.xlu0 %v3188_v10, %s2846_s4  ;;  %v1735_v10 = vld [vmem:[#allocation2 + $0x10a] sm:$0xff] }
 0x19f   : > { %v1027_v2 = vpop.permute.xlu1 %1026  ;;  %v1220_v62 = vpop.permute.xlu0 %1219 }
 0x1a0   : > { %1114 = vst.msk [vmem:[#allocation3 + $0x48] sm:$0xff] %vm1104_vm6, %v1027_v2  ;;  %v1916_v37 = vld [vmem:[#allocation3 + $0x30] sm:$0xff] }
 0x1a1   : > { %1624 = vrot.lane.b32.xlu1 %v1542_v17, %s2850_s17  ;;  %1307 = vst.msk [vmem:[#allocation3 + $0x48] sm:$0xff] %vm1297_vm7, %v1220_v62  ;;  %2648 = vmatprep.mubr.msk.f32.mxu0 %vm1947_vm11, %v1916_v37  ;;  %v1741_v62 = vld [vmem:[#allocation2 + $0x152] sm:$0xff] }
 0x1a2   : > { %1626 = vrot.lane.b32.xlu0 %v1543_v36, %s2850_s17 }
 0x1a3   : > { %v1796_v7 = vpop.permute.xlu1 %1795  ;;  %v1414_v45 = vpop.permute.xlu0 %1413 }
 0x1a4   : > { %1885 = vst.msk [vmem:[#allocation3 + $0x38] sm:$0xff] %vm1877_vm10, %v1796_v7  ;;  %v1742_v7 = vld [vmem:[#allocation2 + $0x15a] sm:$0xff] }
 0x1a5   : > { %1048 = vrot.lane.b32.xlu1 %v1542_v17, %s2847_s5  ;;  %1501 = vst.msk [vmem:[#allocation3 + $0x48] sm:$0xff] %vm1491_vm8, %v1414_v45 }
 0x1a6   : > { %1050 = vrot.lane.b32.xlu0 %v1543_v36, %s2847_s5 }
 0x1a7   : > { %v1412_v31 = vpop.permute.xlu1 %1411  ;;  %v1029_v16 = vpop.permute.xlu0 %1028 }
 0x1a8   : > { %1500 = vst.msk [vmem:[#allocation3 + $0x40] sm:$0xff] %vm1491_vm8, %v1412_v31 }
 0x1a9   : > { %1817 = vrot.lane.b32.xlu1 %v1735_v10, %s2851_s24  ;;  %1115 = vst.msk [vmem:[#allocation3 + $0x50] sm:$0xff] %vm1104_vm6, %v1029_v16 }
 0x1aa   : > { %1819 = vrot.lane.b32.xlu0 %v1736_v44, %s2851_s24 }
 0x1ab   : > { %v1605_v48 = vpop.permute.xlu1 %1604  ;;  %v1917_v53 = vld [vmem:[#allocation3 + $0x38] sm:$0xff]  ;;  %v1798_v19 = vpop.permute.xlu0 %1797 }
 0x1ac   : > { %1693 = vst.msk [vmem:[#allocation3 + $0x40] sm:$0xff] %vm1684_vm9, %v1605_v48  ;;  %2649 = vmatmul.mubr.msk.f32.gmra.mxu0 %vm1947_vm11, %v1917_v53  ;;  %v1358_v53 = vld [vmem:[#allocation2 + $0x170] sm:$0xff] }
 0x1ad   : > { %1241 = vrot.lane.b32.xlu1 %v1735_v10, %s2848_s6  ;;  %1886 = vst.msk [vmem:[#allocation3 + $0x40] sm:$0xff] %vm1877_vm10, %v1798_v19 }
 0x1ae   : > { %1435 = vrot.lane.b32.xlu0 %v3186_v9, %s2849_s7  ;;  %v1544_v9 = vld [vmem:[#allocation2 + $0x121] sm:$0xff] }
 0x1af   : > { %v1607_v57 = vpop.permute.xlu1 %1606  ;;  %v1222_v4 = vpop.permute.xlu0 %1221 }
 0x1b0   : > { %1694 = vst.msk [vmem:[#allocation3 + $0x48] sm:$0xff] %vm1684_vm9, %v1607_v57 }
 0x1b1   : > { %1243 = vrot.lane.b32.xlu1 %v1736_v44, %s2848_s6  ;;  %1308 = vst.msk [vmem:[#allocation3 + $0x50] sm:$0xff] %vm1297_vm7, %v1222_v4  ;;  %v1357_v44 = vld [vmem:[#allocation2 + $0x168] sm:$0xff] }
 0x1b2   : > { %1437 = vrot.lane.b32.xlu0 %v3196_v14, %s2849_s7 }
 0x1b3   : > { %v1031_v1 = vpop.permute.xlu1 %1030  ;;  %v1224_v20 = vpop.permute.xlu0 %1223 }
 0x1b4   : > { %1116 = vst.msk [vmem:[#allocation3 + $0x58] sm:$0xff] %vm1104_vm6, %v1031_v1  ;;  %v1918_v30 = vld [vmem:[#allocation3 + $0x40] sm:$0xff] }
 0x1b5   : > { %859 = vrot.lane.b32.xlu1 %v773_v52, %s2846_s4  ;;  %1309 = vst.msk [vmem:[#allocation3 + $0x58] sm:$0xff] %vm1297_vm7, %v1224_v20  ;;  %2651 = vmatprep.mubr.msk.f32.mxu0 %vm1947_vm11, %v1918_v30  ;;  %v1550_v1 = vld [vmem:[#allocation2 + $0x169] sm:$0xff]  ;;  %v1551_v30 = vld [vmem:[#allocation2 + $0x171] sm:$0xff] }
 0x1b6   : > { %861 = vrot.lane.b32.xlu0 %v3196_v14, %s2846_s4  ;;  %v1737_v14 = vld [vmem:[#allocation2 + $0x122] sm:$0xff] }
 0x1b7   : > { %v1800_v22 = vpop.permute.xlu1 %1799  ;;  %v1418_v50 = vpop.permute.xlu0 %1417 }
 0x1b8   : > { %1887 = vst.msk [vmem:[#allocation3 + $0x48] sm:$0xff] %vm1877_vm10, %v1800_v22 }
 0x1b9   : > { %1628 = vrot.lane.b32.xlu1 %v1544_v9, %s2850_s17  ;;  %1503 = vst.msk [vmem:[#allocation3 + $0x58] sm:$0xff] %vm1491_vm8, %v1418_v50  ;;  %v1743_v50 = vld [vmem:[#allocation2 + $0x16a] sm:$0xff] }
 0x1ba   : > { %1630 = vrot.lane.b32.xlu0 %v1545_v51, %s2850_s17 }
 0x1bb   : > { %v1416_v18 = vpop.permute.xlu1 %1415  ;;  %v1033_v38 = vpop.permute.xlu0 %1032 }
 0x1bc   : > { %1502 = vst.msk [vmem:[#allocation3 + $0x50] sm:$0xff] %vm1491_vm8, %v1416_v18 }
 0x1bd   : > { %1052 = vrot.lane.b32.xlu1 %v1544_v9, %s2847_s5  ;;  %1117 = vst.msk [vmem:[#allocation3 + $0x60] sm:$0xff] %vm1104_vm6, %v1033_v38  ;;  %v1744_v38 = vld [vmem:[#allocation2 + $0x172] sm:$0xff] }
 0x1be   : > { %1054 = vrot.lane.b32.xlu0 %v1545_v51, %s2847_s5 }
 0x1bf   : > { %v1609_v23 = vpop.permute.xlu1 %1608  ;;  %v1919_v63 = vld [vmem:[#allocation3 + $0x48] sm:$0xff]  ;;  %v1802_v59 = vpop.permute.xlu0 %1801 }
 0x1c0   : > { %1695 = vst.msk [vmem:[#allocation3 + $0x50] sm:$0xff] %vm1684_vm9, %v1609_v23  ;;  %2652 = vmatmul.mubr.msk.f32.gmra.mxu0 %vm1947_vm11, %v1919_v63 }
 0x1c1   : > { %1821 = vrot.lane.b32.xlu1 %v1737_v14, %s2851_s24  ;;  %1888 = vst.msk [vmem:[#allocation3 + $0x50] sm:$0xff] %vm1877_vm10, %v1802_v59 }
 0x1c2   : > { %1823 = vrot.lane.b32.xlu0 %v1738_v21, %s2851_s24 }
 0x1c3   : > { %v1611_v6 = vpop.permute.xlu1 %1610  ;;  %v1226_v24 = vpop.permute.xlu0 %1225 }
 0x1c4   : > { %1696 = vst.msk [vmem:[#allocation3 + $0x58] sm:$0xff] %vm1684_vm9, %v1611_v6 }
 0x1c5   : > { %1245 = vrot.lane.b32.xlu1 %v1737_v14, %s2848_s6  ;;  %1310 = vst.msk [vmem:[#allocation3 + $0x60] sm:$0xff] %vm1297_vm7, %v1226_v24  ;;  %v1360_v24 = vld [vmem:[#allocation2 + $0x188] sm:$0xff] }
 0x1c6   : > { %1439 = vrot.lane.b32.xlu0 %v1353_v55, %s2849_s7 }
 0x1c7   : > { %v1035_v3 = vpop.permute.xlu1 %1034  ;;  %v1228_v25 = vpop.permute.xlu0 %1227 }
 0x1c8   : > { %1118 = vst.msk [vmem:[#allocation3 + $0x68] sm:$0xff] %vm1104_vm6, %v1035_v3  ;;  %v1920_v27 = vld [vmem:[#allocation3 + $0x50] sm:$0xff] }
 0x1c9   : > { %1247 = vrot.lane.b32.xlu1 %v1738_v21, %s2848_s6  ;;  %1311 = vst.msk [vmem:[#allocation3 + $0x68] sm:$0xff] %vm1297_vm7, %v1228_v25  ;;  %2654 = vmatprep.mubr.msk.f32.mxu0 %vm1947_vm11, %v1920_v27  ;;  %v1359_v21 = vld [vmem:[#allocation2 + $0x180] sm:$0xff] }
 0x1ca   : > { %1441 = vrot.lane.b32.xlu0 %v1354_v32, %s2849_s7  ;;  %v1552_v27 = vld [vmem:[#allocation2 + $0x181] sm:$0xff] }
 0x1cb   : > { %v1804_v56 = vpop.permute.xlu1 %1803  ;;  %v1422_v41 = vpop.permute.xlu0 %1421 }
 0x1cc   : > { %1889 = vst.msk [vmem:[#allocation3 + $0x58] sm:$0xff] %vm1877_vm10, %v1804_v56 }
 0x1cd   : > { %863 = vrot.lane.b32.xlu1 %v1353_v55, %s2846_s4  ;;  %1505 = vst.msk [vmem:[#allocation3 + $0x68] sm:$0xff] %vm1491_vm8, %v1422_v41  ;;  %v1553_v41 = vld [vmem:[#allocation2 + $0x189] sm:$0xff] }
 0x1ce   : > { %865 = vrot.lane.b32.xlu0 %v1354_v32, %s2846_s4 }
 0x1cf   : > { %v1420_v12 = vpop.permute.xlu1 %1419  ;;  %v1037_v58 = vpop.permute.xlu0 %1036 }
 0x1d0   : > { %1504 = vst.msk [vmem:[#allocation3 + $0x60] sm:$0xff] %vm1491_vm8, %v1420_v12 }
 0x1d1   : > { %1632 = vrot.lane.b32.xlu1 %v1546_v46, %s2850_s17  ;;  %1119 = vst.msk [vmem:[#allocation3 + $0x70] sm:$0xff] %vm1104_vm6, %v1037_v58  ;;  %v1745_v58 = vld [vmem:[#allocation2 + $0x182] sm:$0xff] }
 0x1d2   : > { %1634 = vrot.lane.b32.xlu0 %v1547_v61, %s2850_s17 }
 0x1d3   : > { %v1613_v54 = vpop.permute.xlu1 %1612  ;;  %v1921_v40 = vld [vmem:[#allocation3 + $0x58] sm:$0xff]  ;;  %v1806_v39 = vpop.permute.xlu0 %1805 }
 0x1d4   : > { %1697 = vst.msk [vmem:[#allocation3 + $0x60] sm:$0xff] %vm1684_vm9, %v1613_v54  ;;  %2655 = vmatmul.mubr.msk.f32.gmra.mxu0 %vm1947_vm11, %v1921_v40  ;;  %v1746_v40 = vld [vmem:[#allocation2 + $0x18a] sm:$0xff] }
 0x1d5   : > { %1056 = vrot.lane.b32.xlu1 %v1546_v46, %s2847_s5  ;;  %1890 = vst.msk [vmem:[#allocation3 + $0x60] sm:$0xff] %vm1877_vm10, %v1806_v39 }
 0x1d6   : > { %1058 = vrot.lane.b32.xlu0 %v1547_v61, %s2847_s5 }
 0x1d7   : > { %v1615_v11 = vpop.permute.xlu1 %1614 }
 0x1d8   : > { %1698 = vst.msk [vmem:[#allocation3 + $0x68] sm:$0xff] %vm1684_vm9, %v1615_v11  ;;  %v1230_v5 = vpop.permute.xlu0 %1229 }
 0x1d9   : > { %1825 = vrot.lane.b32.xlu1 %v1739_v49, %s2851_s24  ;;  %1312 = vst.msk [vmem:[#allocation3 + $0x70] sm:$0xff] %vm1297_vm7, %v1230_v5 }
 0x1da   : > { %1827 = vrot.lane.b32.xlu0 %v1740_v43, %s2851_s24 }
 0x1db   : > { %v1039_v8 = vpop.permute.xlu1 %1038 }
 0x1dc   : > { %1120 = vst.msk [vmem:[#allocation3 + $0x78] sm:$0xff] %vm1104_vm6, %v1039_v8  ;;  %v1232_v15 = vpop.permute.xlu0 %1231  ;;  %v1922_v0 = vld [vmem:[#allocation3 + $0x60] sm:$0xff] }
 0x1dd   : > { %1249 = vrot.lane.b32.xlu1 %v1739_v49, %s2848_s6  ;;  %1313 = vst.msk [vmem:[#allocation3 + $0x78] sm:$0xff] %vm1297_vm7, %v1232_v15  ;;  %2657 = vmatprep.mubr.msk.f32.mxu0 %vm1947_vm11, %v1922_v0  ;;  %v1554_v15 = vld [vmem:[#allocation2 + $0x199] sm:$0xff] }
 0x1de   : > { %1443 = vrot.lane.b32.xlu0 %v1355_v28, %s2849_s7 }
 0x1df   : > { %v1808_v60 = vpop.permute.xlu1 %1807 }
 0x1e0   : > { %1891 = vst.msk [vmem:[#allocation3 + $0x68] sm:$0xff] %vm1877_vm10, %v1808_v60  ;;  %v1426_v42 = vpop.permute.xlu0 %1425  ;;  %v1362_v60 = vld [vmem:[#allocation2 + $0x1a0] sm:$0xff] }
 0x1e1   : > { %1251 = vrot.lane.b32.xlu1 %v1740_v43, %s2848_s6  ;;  %1507 = vst.msk [vmem:[#allocation3 + $0x78] sm:$0xff] %vm1491_vm8, %v1426_v42  ;;  %v1361_v43 = vld [vmem:[#allocation2 + $0x198] sm:$0xff] }
 0x1e2   : > { %1445 = vrot.lane.b32.xlu0 %v1356_v29, %s2849_s7  ;;  %v1747_v42 = vld [vmem:[#allocation2 + $0x19a] sm:$0xff] }
 0x1e3   : > { %v1424_v33 = vpop.permute.xlu1 %1423 }
 0x1e4   : > { %1506 = vst.msk [vmem:[#allocation3 + $0x70] sm:$0xff] %vm1491_vm8, %v1424_v33  ;;  %v1041_v26 = vpop.permute.xlu0 %1040 }
 0x1e5   : > { %867 = vrot.lane.b32.xlu1 %v1355_v28, %s2846_s4  ;;  %1121 = vst.msk [vmem:[#allocation3 + $0x80] sm:$0xff] %vm1104_vm6, %v1041_v26  ;;  %v1555_v26 = vld [vmem:[#allocation2 + $0x1a1] sm:$0xff] }
 0x1e6   : > { %869 = vrot.lane.b32.xlu0 %v1356_v29, %s2846_s4 }
 0x1e7   : > { %v1617_v47 = vpop.permute.xlu1 %1616  ;;  %v1923_v34 = vld [vmem:[#allocation3 + $0x68] sm:$0xff] }
 0x1e8   : > { %1699 = vst.msk [vmem:[#allocation3 + $0x70] sm:$0xff] %vm1684_vm9, %v1617_v47  ;;  %2658 = vmatmul.mubr.msk.f32.gmra.mxu0 %vm1947_vm11, %v1923_v34  ;;  %v1810_v17 = vpop.permute.xlu0 %1809 }
 0x1e9   : > { %1636 = vrot.lane.b32.xlu1 %v1548_v13, %s2850_s17  ;;  %1892 = vst.msk [vmem:[#allocation3 + $0x70] sm:$0xff] %vm1877_vm10, %v1810_v17  ;;  %v1748_v17 = vld [vmem:[#allocation2 + $0x1a2] sm:$0xff] }
 0x1ea   : > { %1638 = vrot.lane.b32.xlu0 %v1549_v35, %s2850_s17 }
 0x1eb   : > { %v1619_v2 = vpop.permute.xlu1 %1618 }
 0x1ec   : > { %1700 = vst.msk [vmem:[#allocation3 + $0x78] sm:$0xff] %vm1684_vm9, %v1619_v2  ;;  %v1234_v36 = vpop.permute.xlu0 %1233 }
 0x1ed   : > { %1060 = vrot.lane.b32.xlu1 %v1548_v13, %s2847_s5  ;;  %1314 = vst.msk [vmem:[#allocation3 + $0x80] sm:$0xff] %vm1297_vm7, %v1234_v36 }
 0x1ee   : > { %1062 = vrot.lane.b32.xlu0 %v1549_v35, %s2847_s5 }
 0x1ef   : > { %v1043_v37 = vpop.permute.xlu1 %1042 }
 0x1f0   : > { %1122 = vst.msk [vmem:[#allocation3 + $0x88] sm:$0xff] %vm1104_vm6, %v1043_v37  ;;  %v1236_v45 = vpop.permute.xlu0 %1235  ;;  %v1924_v10 = vld [vmem:[#allocation3 + $0x70] sm:$0xff] }
 0x1f1   : > { %1829 = vrot.lane.b32.xlu1 %v1741_v62, %s2851_s24  ;;  %1315 = vst.msk [vmem:[#allocation3 + $0x88] sm:$0xff] %vm1297_vm7, %v1236_v45  ;;  %2660 = vmatprep.mubr.msk.f32.mxu0 %vm1947_vm11, %v1924_v10 }
 0x1f2   : > { %1831 = vrot.lane.b32.xlu0 %v1742_v7, %s2851_s24 }
 0x1f3   : > { %v1812_v31 = vpop.permute.xlu1 %1811 }
 0x1f4   : > { %1893 = vst.msk [vmem:[#allocation3 + $0x78] sm:$0xff] %vm1877_vm10, %v1812_v31  ;;  %v1430_v16 = vpop.permute.xlu0 %1429 }
 0x1f5   : > { %1253 = vrot.lane.b32.xlu1 %v1741_v62, %s2848_s6  ;;  %1509 = vst.msk [vmem:[#allocation3 + $0x88] sm:$0xff] %vm1491_vm8, %v1430_v16 }
 0x1f6   : > { %1447 = vrot.lane.b32.xlu0 %v1357_v44, %s2849_s7 }
 0x1f7   : > { %v1428_v48 = vpop.permute.xlu1 %1427 }
 0x1f8   : > { %1508 = vst.msk [vmem:[#allocation3 + $0x80] sm:$0xff] %vm1491_vm8, %v1428_v48  ;;  %v854_v19 = vpop.permute.xlu0 %853 }
 0x1f9   : > { %1255 = vrot.lane.b32.xlu1 %v1742_v7, %s2848_s6  ;;  %931 = vst.msk [vmem:[#allocation3 + $0x98] sm:$0xff] %vm911_vm5, %v854_v19 }
 0x1fa   : > { %1449 = vrot.lane.b32.xlu0 %v1358_v53, %s2849_s7 }
 0x1fb   : > { %v1621_v57 = vpop.permute.xlu1 %1620  ;;  %v1925_v4 = vld [vmem:[#allocation3 + $0x78] sm:$0xff] }
 0x1fc   : > { %1701 = vst.msk [vmem:[#allocation3 + $0x80] sm:$0xff] %vm1684_vm9, %v1621_v57  ;;  %2661 = vmatmul.mubr.msk.f32.gmra.mxu0 %vm1947_vm11, %v1925_v4  ;;  %v1623_v52 = vpop.permute.xlu0 %1622 }
 0x1fd   : > { %871 = vrot.lane.b32.xlu1 %v1357_v44, %s2846_s4  ;;  %1702 = vst.msk [vmem:[#allocation3 + $0x88] sm:$0xff] %vm1684_vm9, %v1623_v52 }
 0x1fe   : > { %873 = vrot.lane.b32.xlu0 %v1358_v53, %s2846_s4 }
 0x1ff   : > { %v1045_v20 = vpop.permute.xlu1 %1044 }
 0x200   : > { %1123 = vst.msk [vmem:[#allocation3 + $0x90] sm:$0xff] %vm1104_vm6, %v1045_v20  ;;  %v1047_v9 = vpop.permute.xlu0 %1046 }
 0x201   : > { %1640 = vrot.lane.b32.xlu1 %v1550_v1, %s2850_s17  ;;  %1124 = vst.msk [vmem:[#allocation3 + $0x98] sm:$0xff] %vm1104_vm6, %v1047_v9 }
 0x202   : > { %1642 = vrot.lane.b32.xlu0 %v1551_v30, %s2850_s17 }
 0x203   : > { %v1814_v22 = vpop.permute.xlu1 %1813 }
 0x204   : > { %1894 = vst.msk [vmem:[#allocation3 + $0x80] sm:$0xff] %vm1877_vm10, %v1814_v22  ;;  %v1816_v51 = vpop.permute.xlu0 %1815 }
 0x205   : > { %1064 = vrot.lane.b32.xlu1 %v1550_v1, %s2847_s5  ;;  %1895 = vst.msk [vmem:[#allocation3 + $0x88] sm:$0xff] %vm1877_vm10, %v1816_v51 }
 0x206   : > { %1066 = vrot.lane.b32.xlu0 %v1551_v30, %s2847_s5 }
 0x207   : > { %v1238_v18 = vpop.permute.xlu1 %1237 }
 0x208   : > { %1316 = vst.msk [vmem:[#allocation3 + $0x90] sm:$0xff] %vm1297_vm7, %v1238_v18  ;;  %v1432_v14 = vpop.permute.xlu0 %1431 }
 0x209   : > { %1833 = vrot.lane.b32.xlu1 %v1743_v50, %s2851_s24  ;;  %1510 = vst.msk [vmem:[#allocation3 + $0x90] sm:$0xff] %vm1491_vm8, %v1432_v14 }
 0x20a   : > { %1835 = vrot.lane.b32.xlu0 %v1744_v38, %s2851_s24 }
 0x20b   : > { %v1240_v23 = vpop.permute.xlu1 %1239  ;;  %v1926_v63 = vld [vmem:[#allocation3 + $0x80] sm:$0xff] }
 0x20c   : > { %1317 = vst.msk [vmem:[#allocation3 + $0x98] sm:$0xff] %vm1297_vm7, %v1240_v23  ;;  %2663 = vmatprep.mubr.msk.f32.mxu1 %vm1947_vm11, %v1926_v63  ;;  %v1434_v59 = vpop.permute.xlu0 %1433  ;;  %v1927_v6 = vld [vmem:[#allocation3 + $0x88] sm:$0xff] }
 0x20d   : > { %1257 = vrot.lane.b32.xlu1 %v1743_v50, %s2848_s6  ;;  %1511 = vst.msk [vmem:[#allocation3 + $0x98] sm:$0xff] %vm1491_vm8, %v1434_v59  ;;  %2664 = vmatmul.mubr.msk.f32.vlgmr.msra.gmra.mxu1 %vm1947_vm11, %v1927_v6 }
 0x20e   : > { %1451 = vrot.lane.b32.xlu0 %v1359_v21, %s2849_s7 }
 0x20f   : > { %v856_v55 = vpop.permute.xlu1 %855 }
 0x210   : > { %932 = vst.msk [vmem:[#allocation3 + $0xa0] sm:$0xff] %vm911_vm5, %v856_v55  ;;  %v858_v3 = vpop.permute.xlu0 %857 }
 0x211   : > { %1259 = vrot.lane.b32.xlu1 %v1744_v38, %s2848_s6  ;;  %933 = vst.msk [vmem:[#allocation3 + $0xa8] sm:$0xff] %vm911_vm5, %v858_v3 }
 0x212   : > { %1453 = vrot.lane.b32.xlu0 %v1360_v24, %s2849_s7 }
 0x213   : > { %v1625_v32 = vpop.permute.xlu1 %1624 }
 0x214   : > { %1703 = vst.msk [vmem:[#allocation3 + $0x90] sm:$0xff] %vm1684_vm9, %v1625_v32  ;;  %v1627_v25 = vpop.permute.xlu0 %1626 }
 0x215   : > { %875 = vrot.lane.b32.xlu1 %v1359_v21, %s2846_s4  ;;  %1704 = vst.msk [vmem:[#allocation3 + $0x98] sm:$0xff] %vm1684_vm9, %v1627_v25 }
 0x216   : > { %877 = vrot.lane.b32.xlu0 %v1360_v24, %s2846_s4  ;;  %s2546_s4 = sshll.u32 %s3814_s28, 8 }
 0x217   : > { %v1049_v56 = vpop.permute.xlu1 %1048 }
 0x218   : > { %1125 = vst.msk [vmem:[#allocation3 + $0xa0] sm:$0xff] %vm1104_vm6, %v1049_v56  ;;  %v1051_v46 = vpop.permute.xlu0 %1050 }
 0x219   : > { %1644 = vrot.lane.b32.xlu1 %v1552_v27, %s2850_s17  ;;  %1126 = vst.msk [vmem:[#allocation3 + $0xa8] sm:$0xff] %vm1104_vm6, %v1051_v46 }
 0x21a   : > { %1646 = vrot.lane.b32.xlu0 %v1553_v41, %s2850_s17 }
 0x21b   : > { %v1818_v12 = vpop.permute.xlu1 %1817 }
 0x21c   : > { %1896 = vst.msk [vmem:[#allocation3 + $0x90] sm:$0xff] %vm1877_vm10, %v1818_v12  ;;  %v1820_v61 = vpop.permute.xlu0 %1819 }
 0x21d   : > { %1068 = vrot.lane.b32.xlu1 %v1552_v27, %s2847_s5  ;;  %1897 = vst.msk [vmem:[#allocation3 + $0x98] sm:$0xff] %vm1877_vm10, %v1820_v61 }
 0x21e   : > { %1070 = vrot.lane.b32.xlu0 %v1553_v41, %s2847_s5  ;;  %s3825_s5 = scalar_lea.vmem [#allocation4], %s2546_s4 }
 0x21f   : > { %v1242_v54 = vpop.permute.xlu1 %1241 }
 0x220   : > { %1318 = vst.msk [vmem:[#allocation3 + $0xa0] sm:$0xff] %vm1297_vm7, %v1242_v54  ;;  %v1436_v39 = vpop.permute.xlu0 %1435 }
 0x221   : > { %1837 = vrot.lane.b32.xlu1 %v1745_v58, %s2851_s24  ;;  %1512 = vst.msk [vmem:[#allocation3 + $0xa0] sm:$0xff] %vm1491_vm8, %v1436_v39 }
 0x222   : > { %1839 = vrot.lane.b32.xlu0 %v1746_v40, %s2851_s24 }
 0x223   : > { %v1244_v49 = vpop.permute.xlu1 %1243  ;;  %v1928_v11 = vld [vmem:[#allocation3 + $0x90] sm:$0xff] }
 0x224   : > { %1319 = vst.msk [vmem:[#allocation3 + $0xa8] sm:$0xff] %vm1297_vm7, %v1244_v49  ;;  %2666 = vmatprep.mubr.msk.f32.mxu1 %vm1947_vm11, %v1928_v11  ;;  %v1438_v5 = vpop.permute.xlu0 %1437  ;;  %v1929_v8 = vld [vmem:[#allocation3 + $0x98] sm:$0xff] }
 0x225   : > { %1261 = vrot.lane.b32.xlu1 %v1745_v58, %s2848_s6  ;;  %1513 = vst.msk [vmem:[#allocation3 + $0xa8] sm:$0xff] %vm1491_vm8, %v1438_v5  ;;  %2667 = vmatmul.mubr.msk.f32.gmra.mxu1 %vm1947_vm11, %v1929_v8 }
 0x226   : > { %1455 = vrot.lane.b32.xlu0 %v1361_v43, %s2849_s7 }
 0x227   : > { %v860_v28 = vpop.permute.xlu1 %859 }
 0x228   : > { %934 = vst.msk [vmem:[#allocation3 + $0xb0] sm:$0xff] %vm911_vm5, %v860_v28  ;;  %v862_v0 = vpop.permute.xlu0 %861 }
 0x229   : > { %1263 = vrot.lane.b32.xlu1 %v1746_v40, %s2848_s6  ;;  %935 = vst.msk [vmem:[#allocation3 + $0xb8] sm:$0xff] %vm911_vm5, %v862_v0  ;;  %s2591_s6 = sshll.u32 %s2896_s16, 12 }
 0x22a   : > { %1648 = vrot.lane.b32.xlu0 %v1554_v15, %s2850_s17  ;;  %s3935_s10 = scalar_lea.hbm %s4008_s2, %s2591_s6 }
 0x22b   : > { %v1629_v29 = vpop.permute.xlu1 %1628 }
 0x22c   : > { %1705 = vst.msk [vmem:[#allocation3 + $0xa0] sm:$0xff] %vm1684_vm9, %v1629_v29  ;;  %v1631_v33 = vpop.permute.xlu0 %1630 }
 0x22d   : > { %1457 = vrot.lane.b32.xlu1 %v1362_v60, %s2849_s7  ;;  %1706 = vst.msk [vmem:[#allocation3 + $0xa8] sm:$0xff] %vm1684_vm9, %v1631_v33  ;;  %s2435_s7 = sshll.u32 %s3825_s5, 4  ;;  %s3938_s7 = int_to_ptr.vmem [resolvable:$true] %s2435_s7 }
 0x22e   : > { %1841 = vrot.lane.b32.xlu0 %v1747_v42, %s2851_s24  ;;  %p2758_p0 = scmp.lt.s32.totalorder %s3938_s7, %s2756_s20 }
 0x22f   : > { %v1053_v13 = vpop.permute.xlu1 %1052 }
 0x230   : > { %1127 = vst.msk [vmem:[#allocation3 + $0xb0] sm:$0xff] %vm1104_vm6, %v1053_v13  ;;  %v2641_v47 = vpop.f32.mrf.mxu0  ;;  %v1055_v34 = vpop.permute.xlu0 %1054 }
 0x231   : > { %2274 = vst [vmem:[%s3825_s5 + $0x8] sm:$0xff] %v2641_v47  ;;  %1650 = vrot.lane.b32.xlu1 %v1555_v26, %s2850_s17  ;;  %1128 = vst.msk [vmem:[#allocation3 + $0xb8] sm:$0xff] %vm1104_vm6, %v1055_v34  ;;  %v2344_v2 = vmul.f32 %v2641_v47, %v2641_v47  ;;  %s2751_s17 = scalar_lea.vmem %s3938_s7, 4096 }
 0x232   : > { %v2114_v35 = vpop.f32.mrf.mxu0  ;;  %p2752_p11 = scmp.ne.s32.totalorder %s3938_s7, %s2751_s17 }
 0x233   : > { %2273 = vst [vmem:[%s3825_s5] sm:$0xff] %v2114_v35  ;;  %v2305_v36 = vadd.f32 %v2641_v47, %v2114_v35  ;;  %v2343_v62 = vmul.f32 %v2114_v35, %v2114_v35  ;;  %v1822_v37 = vpop.permute.xlu1 %1821 }
 0x234   : > { %1898 = vst.msk [vmem:[#allocation3 + $0xa0] sm:$0xff] %vm1877_vm10, %v1822_v37  ;;  %v1824_v45 = vpop.permute.xlu0 %1823  ;;  %p2753_p12 = pnand %p2752_p11, %p2913_p5 }
 0x235   : > { %v2375_v7 = vadd.f32 %v2344_v2, %v2343_v62  ;;  %1843 = vrot.lane.b32.xlu1 %v1748_v17, %s2851_s24  ;;  %1899 = vst.msk [vmem:[#allocation3 + $0xa8] sm:$0xff] %vm1877_vm10, %v1824_v45  ;;  %s2757_s24 = scalar_lea.vmem %s2756_s20, 8192 }
 0x236   : > { %p2754_p13 = pneg %p2753_p12  ;;  %p2759_p1 = scmp.lt.s32.totalorder %s2757_s24, %s2751_s17 }
 0x237   : > { %v1246_v10 = vpop.permute.xlu1 %1245 }
 0x238   : > { %1320 = vst.msk [vmem:[#allocation3 + $0xb0] sm:$0xff] %vm1297_vm7, %v1246_v10  ;;  %v1440_v31 = vpop.permute.xlu0 %1439  ;;  %p2760_p2 = por %p2759_p1, %p2758_p0 }
 0x239   : > { %1514 = vst.msk [vmem:[#allocation3 + $0xb0] sm:$0xff] %vm1491_vm8, %v1440_v31 }
 0x23a   : > { %p2761_p3 = pnand %p2760_p2, %p2754_p13 }
 0x23b   : > { %v1248_v44 = vpop.permute.xlu1 %1247  ;;  %v1930_v16 = vld [vmem:[#allocation3 + $0xa0] sm:$0xff] }
 0x23c   : > { %1321 = vst.msk [vmem:[#allocation3 + $0xb8] sm:$0xff] %vm1297_vm7, %v1248_v44  ;;  %2669 = vmatprep.mubr.msk.f32.mxu1 %vm1947_vm11, %v1930_v16  ;;  %v1442_v48 = vpop.permute.xlu0 %1441  ;;  %v1931_v53 = vld [vmem:[#allocation3 + $0xa8] sm:$0xff] }
 0x23d   : > { %1515 = vst.msk [vmem:[#allocation3 + $0xb8] sm:$0xff] %vm1491_vm8, %v1442_v48  ;;  %2670 = vmatmul.mubr.msk.f32.gmra.mxu1 %vm1947_vm11, %v1931_v53 }
 0x23f   : > { %v864_v19 = vpop.permute.xlu1 %863 }
 0x240   : > { %936 = vst.msk [vmem:[#allocation3 + $0xc0] sm:$0xff] %vm911_vm5, %v864_v19  ;;  %v866_v57 = vpop.permute.xlu0 %865 }
 0x241   : > { %937 = vst.msk [vmem:[#allocation3 + $0xc8] sm:$0xff] %vm911_vm5, %v866_v57 }
 0x243   : > { %v1633_v4 = vpop.permute.xlu1 %1632 }
 0x244   : > { %1707 = vst.msk [vmem:[#allocation3 + $0xb0] sm:$0xff] %vm1684_vm9, %v1633_v4  ;;  %v2644_v52 = vpop.f32.mrf.mxu0  ;;  %v1635_v1 = vpop.permute.xlu0 %1634 }
 0x245   : > { %2276 = vst [vmem:[%s3825_s5 + $0x18] sm:$0xff] %v2644_v52  ;;  %1708 = vst.msk [vmem:[#allocation3 + $0xb8] sm:$0xff] %vm1684_vm9, %v1635_v1  ;;  %v2346_v51 = vmul.f32 %v2644_v52, %v2644_v52 }
 0x246   : > { %v2124_v20 = vpop.f32.mrf.mxu0 }
 0x247   : > { %2275 = vst [vmem:[%s3825_s5 + $0x10] sm:$0xff] %v2124_v20  ;;  %v2306_v30 = vadd.f32 %v2305_v36, %v2124_v20  ;;  %v2345_v9 = vmul.f32 %v2124_v20, %v2124_v20  ;;  %v1057_v22 = vpop.permute.xlu1 %1056 }
 0x248   : > { %1129 = vst.msk [vmem:[#allocation3 + $0xc0] sm:$0xff] %vm1104_vm6, %v1057_v22  ;;  %v1059_v18 = vpop.permute.xlu0 %1058 }
 0x249   : > { %v2376_v50 = vadd.f32 %v2375_v7, %v2345_v9  ;;  %v2307_v38 = vadd.f32 %v2644_v52, %v2306_v30  ;;  %1130 = vst.msk [vmem:[#allocation3 + $0xc8] sm:$0xff] %vm1104_vm6, %v1059_v18 }
 0x24b   : > { %v1826_v14 = vpop.permute.xlu1 %1825  ;;  %v2377_v23 = vadd.f32 %v2376_v50, %v2346_v51 }
 0x24c   : > { %1900 = vst.msk [vmem:[#allocation3 + $0xb0] sm:$0xff] %vm1877_vm10, %v1826_v14  ;;  %v1828_v63 = vpop.permute.xlu0 %1827 }
 0x24d   : > { %1901 = vst.msk [vmem:[#allocation3 + $0xb8] sm:$0xff] %vm1877_vm10, %v1828_v63 }
 0x24f   : > { %v1250_v21 = vpop.permute.xlu1 %1249 }
 0x250   : > { %1322 = vst.msk [vmem:[#allocation3 + $0xc0] sm:$0xff] %vm1297_vm7, %v1250_v21  ;;  %v1444_v59 = vpop.permute.xlu0 %1443 }
 0x251   : > { %1516 = vst.msk [vmem:[#allocation3 + $0xc0] sm:$0xff] %vm1491_vm8, %v1444_v59 }
 0x253   : > { %v1252_v6 = vpop.permute.xlu1 %1251  ;;  %v1932_v55 = vld [vmem:[#allocation3 + $0xb0] sm:$0xff] }
 0x254   : > { %1323 = vst.msk [vmem:[#allocation3 + $0xc8] sm:$0xff] %vm1297_vm7, %v1252_v6  ;;  %2672 = vmatprep.mubr.msk.f32.mxu1 %vm1947_vm11, %v1932_v55  ;;  %v1446_v24 = vpop.permute.xlu0 %1445  ;;  %v1933_v3 = vld [vmem:[#allocation3 + $0xb8] sm:$0xff] }
 0x255   : > { %1517 = vst.msk [vmem:[#allocation3 + $0xc8] sm:$0xff] %vm1491_vm8, %v1446_v24  ;;  %2673 = vmatmul.mubr.msk.f32.gmra.mxu1 %vm1947_vm11, %v1933_v3 }
 0x257   : > { %v868_v32 = vpop.permute.xlu1 %867 }
 0x258   : > { %938 = vst.msk [vmem:[#allocation3 + $0xd0] sm:$0xff] %vm911_vm5, %v868_v32  ;;  %v2647_v25 = vpop.f32.mrf.mxu0  ;;  %v870_v27 = vpop.permute.xlu0 %869 }
 0x259   : > { %2278 = vst [vmem:[%s3825_s5 + $0x28] sm:$0xff] %v2647_v25  ;;  %939 = vst.msk [vmem:[#allocation3 + $0xd8] sm:$0xff] %vm911_vm5, %v870_v27  ;;  %v2348_v61 = vmul.f32 %v2647_v25, %v2647_v25 }
 0x25a   : > { %v2134_v56 = vpop.f32.mrf.mxu0 }
 0x25b   : > { %2277 = vst [vmem:[%s3825_s5 + $0x20] sm:$0xff] %v2134_v56  ;;  %v2308_v41 = vadd.f32 %v2307_v38, %v2134_v56  ;;  %v2347_v46 = vmul.f32 %v2134_v56, %v2134_v56  ;;  %v1637_v12 = vpop.permute.xlu1 %1636 }
 0x25c   : > { %1709 = vst.msk [vmem:[#allocation3 + $0xc0] sm:$0xff] %vm1684_vm9, %v1637_v12  ;;  %v1639_v54 = vpop.permute.xlu0 %1638 }
 0x25d   : > { %v2378_v58 = vadd.f32 %v2377_v23, %v2347_v46  ;;  %v2309_v40 = vadd.f32 %v2647_v25, %v2308_v41  ;;  %1710 = vst.msk [vmem:[#allocation3 + $0xc8] sm:$0xff] %vm1684_vm9, %v1639_v54 }
 0x25f   : > { %v1061_v39 = vpop.permute.xlu1 %1060  ;;  %v2379_v49 = vadd.f32 %v2378_v58, %v2348_v61 }
 0x260   : > { %1131 = vst.msk [vmem:[#allocation3 + $0xd0] sm:$0xff] %vm1104_vm6, %v1061_v39  ;;  %v1063_v11 = vpop.permute.xlu0 %1062 }
 0x261   : > { %1132 = vst.msk [vmem:[#allocation3 + $0xd8] sm:$0xff] %vm1104_vm6, %v1063_v11 }
 0x263   : > { %v1830_v43 = vpop.permute.xlu1 %1829 }
 0x264   : > { %1902 = vst.msk [vmem:[#allocation3 + $0xc0] sm:$0xff] %vm1877_vm10, %v1830_v43  ;;  %v1832_v5 = vpop.permute.xlu0 %1831 }
 0x265   : > { %1903 = vst.msk [vmem:[#allocation3 + $0xc8] sm:$0xff] %vm1877_vm10, %v1832_v5 }
 0x267   : > { %v1254_v8 = vpop.permute.xlu1 %1253 }
 0x268   : > { %1324 = vst.msk [vmem:[#allocation3 + $0xd0] sm:$0xff] %vm1297_vm7, %v1254_v8  ;;  %v1448_v28 = vpop.permute.xlu0 %1447 }
 0x269   : > { %1518 = vst.msk [vmem:[#allocation3 + $0xd0] sm:$0xff] %vm1491_vm8, %v1448_v28 }
 0x26b   : > { %v1256_v15 = vpop.permute.xlu1 %1255  ;;  %v1934_v0 = vld [vmem:[#allocation3 + $0xc0] sm:$0xff] }
 0x26c   : > { %1325 = vst.msk [vmem:[#allocation3 + $0xd8] sm:$0xff] %vm1297_vm7, %v1256_v15  ;;  %v2650_v60 = vpop.f32.mrf.mxu0  ;;  %2675 = vmatprep.mubr.msk.f32.mxu1 %vm1947_vm11, %v1934_v0  ;;  %v1450_v29 = vpop.permute.xlu0 %1449  ;;  %v1935_v42 = vld [vmem:[#allocation3 + $0xc8] sm:$0xff] }
 0x26d   : > { %2280 = vst [vmem:[%s3825_s5 + $0x38] sm:$0xff] %v2650_v60  ;;  %1519 = vst.msk [vmem:[#allocation3 + $0xd8] sm:$0xff] %vm1491_vm8, %v1450_v29  ;;  %2676 = vmatmul.mubr.msk.f32.gmra.mxu1 %vm1947_vm11, %v1935_v42  ;;  %v2350_v34 = vmul.f32 %v2650_v60, %v2650_v60 }
 0x26e   : > { %v2144_v33 = vpop.f32.mrf.mxu0 }
 0x26f   : > { %2279 = vst [vmem:[%s3825_s5 + $0x30] sm:$0xff] %v2144_v33  ;;  %v2310_v26 = vadd.f32 %v2309_v40, %v2144_v33  ;;  %v2349_v13 = vmul.f32 %v2144_v33, %v2144_v33  ;;  %v872_v47 = vpop.permute.xlu1 %871 }
 0x270   : > { %940 = vst.msk [vmem:[#allocation3 + $0xe0] sm:$0xff] %vm911_vm5, %v872_v47  ;;  %v874_v17 = vpop.permute.xlu0 %873 }
 0x271   : > { %v2380_v35 = vadd.f32 %v2379_v49, %v2349_v13  ;;  %v2311_v2 = vadd.f32 %v2650_v60, %v2310_v26  ;;  %941 = vst.msk [vmem:[#allocation3 + $0xe8] sm:$0xff] %vm911_vm5, %v874_v17 }
 0x273   : > { %v1641_v36 = vpop.permute.xlu1 %1640  ;;  %v2381_v62 = vadd.f32 %v2380_v35, %v2350_v34 }
 0x274   : > { %1711 = vst.msk [vmem:[#allocation3 + $0xd0] sm:$0xff] %vm1684_vm9, %v1641_v36  ;;  %v1643_v37 = vpop.permute.xlu0 %1642 }
 0x275   : > { %1712 = vst.msk [vmem:[#allocation3 + $0xd8] sm:$0xff] %vm1684_vm9, %v1643_v37 }
 0x277   : > { %v1065_v7 = vpop.permute.xlu1 %1064 }
 0x278   : > { %1133 = vst.msk [vmem:[#allocation3 + $0xe0] sm:$0xff] %vm1104_vm6, %v1065_v7  ;;  %v1067_v45 = vpop.permute.xlu0 %1066 }
 0x279   : > { %1134 = vst.msk [vmem:[#allocation3 + $0xe8] sm:$0xff] %vm1104_vm6, %v1067_v45 }
 0x27b   : > { %v1834_v10 = vpop.permute.xlu1 %1833 }
 0x27c   : > { %1904 = vst.msk [vmem:[#allocation3 + $0xd0] sm:$0xff] %vm1877_vm10, %v1834_v10  ;;  %v1836_v31 = vpop.permute.xlu0 %1835 }
 0x27d   : > { %1905 = vst.msk [vmem:[#allocation3 + $0xd8] sm:$0xff] %vm1877_vm10, %v1836_v31 }
 0x27f   : > { %v1258_v44 = vpop.permute.xlu1 %1257 }
 0x280   : > { %1326 = vst.msk [vmem:[#allocation3 + $0xe0] sm:$0xff] %vm1297_vm7, %v1258_v44  ;;  %v2653_v16 = vpop.f32.mrf.mxu0  ;;  %v1452_v48 = vpop.permute.xlu0 %1451 }
 0x281   : > { %2282 = vst [vmem:[%s3825_s5 + $0x48] sm:$0xff] %v2653_v16  ;;  %1520 = vst.msk [vmem:[#allocation3 + $0xe0] sm:$0xff] %vm1491_vm8, %v1452_v48  ;;  %v2352_v1 = vmul.f32 %v2653_v16, %v2653_v16 }
 0x282   : > { %v2154_v53 = vpop.f32.mrf.mxu0 }
 0x283   : > { %2281 = vst [vmem:[%s3825_s5 + $0x40] sm:$0xff] %v2154_v53  ;;  %v2312_v19 = vadd.f32 %v2311_v2, %v2154_v53  ;;  %v2351_v57 = vmul.f32 %v2154_v53, %v2154_v53  ;;  %v1260_v4 = vpop.permute.xlu1 %1259  ;;  %v1936_v52 = vld [vmem:[#allocation3 + $0xd0] sm:$0xff] }
 0x284   : > { %1327 = vst.msk [vmem:[#allocation3 + $0xe8] sm:$0xff] %vm1297_vm7, %v1260_v4  ;;  %2678 = vmatprep.mubr.msk.f32.mxu1 %vm1947_vm11, %v1936_v52  ;;  %v1454_v30 = vpop.permute.xlu0 %1453  ;;  %v1937_v9 = vld [vmem:[#allocation3 + $0xd8] sm:$0xff] }
 0x285   : > { %v2382_v20 = vadd.f32 %v2381_v62, %v2351_v57  ;;  %v2313_v22 = vadd.f32 %v2653_v16, %v2312_v19  ;;  %1521 = vst.msk [vmem:[#allocation3 + $0xe8] sm:$0xff] %vm1491_vm8, %v1454_v30  ;;  %2679 = vmatmul.mubr.msk.f32.gmra.mxu1 %vm1947_vm11, %v1937_v9 }
 0x287   : > { %v876_v51 = vpop.permute.xlu1 %875  ;;  %v2383_v50 = vadd.f32 %v2382_v20, %v2352_v1 }
 0x288   : > { %942 = vst.msk [vmem:[#allocation3 + $0xf0] sm:$0xff] %vm911_vm5, %v876_v51  ;;  %v878_v18 = vpop.permute.xlu0 %877 }
 0x289   : > { %943 = vst.msk [vmem:[#allocation3 + $0xf8] sm:$0xff] %vm911_vm5, %v878_v18 }
 0x28b   : > { %v1645_v38 = vpop.permute.xlu1 %1644 }
 0x28c   : > { %1713 = vst.msk [vmem:[#allocation3 + $0xe0] sm:$0xff] %vm1684_vm9, %v1645_v38  ;;  %v1647_v14 = vpop.permute.xlu0 %1646 }
 0x28d   : > { %1714 = vst.msk [vmem:[#allocation3 + $0xe8] sm:$0xff] %vm1684_vm9, %v1647_v14 }
 0x28f   : > { %v1069_v23 = vpop.permute.xlu1 %1068 }
 0x290   : > { %1135 = vst.msk [vmem:[#allocation3 + $0xf0] sm:$0xff] %vm1104_vm6, %v1069_v23  ;;  %v1071_v63 = vpop.permute.xlu0 %1070 }
 0x291   : > { %1136 = vst.msk [vmem:[#allocation3 + $0xf8] sm:$0xff] %vm1104_vm6, %v1071_v63 }
 0x293   : > { %v1838_v21 = vpop.permute.xlu1 %1837 }
 0x294   : > { %1906 = vst.msk [vmem:[#allocation3 + $0xe0] sm:$0xff] %vm1877_vm10, %v1838_v21  ;;  %v2656_v59 = vpop.f32.mrf.mxu0  ;;  %v1840_v6 = vpop.permute.xlu0 %1839 }
 0x295   : > { %2284 = vst [vmem:[%s3825_s5 + $0x58] sm:$0xff] %v2656_v59  ;;  %1907 = vst.msk [vmem:[#allocation3 + $0xe8] sm:$0xff] %vm1877_vm10, %v1840_v6  ;;  %v2354_v25 = vmul.f32 %v2656_v59, %v2656_v59 }
 0x296   : > { %v2164_v55 = vpop.f32.mrf.mxu0 }
 0x297   : > { %2283 = vst [vmem:[%s3825_s5 + $0x50] sm:$0xff] %v2164_v55  ;;  %v2314_v24 = vadd.f32 %v2313_v22, %v2164_v55  ;;  %v2353_v3 = vmul.f32 %v2164_v55, %v2164_v55  ;;  %v1262_v32 = vpop.permute.xlu1 %1261 }
 0x298   : > { %1328 = vst.msk [vmem:[#allocation3 + $0xf0] sm:$0xff] %vm1297_vm7, %v1262_v32  ;;  %v1456_v56 = vpop.permute.xlu0 %1455 }
 0x299   : > { %v2384_v27 = vadd.f32 %v2383_v50, %v2353_v3  ;;  %v2315_v41 = vadd.f32 %v2656_v59, %v2314_v24  ;;  %1522 = vst.msk [vmem:[#allocation3 + $0xf0] sm:$0xff] %vm1491_vm8, %v1456_v56 }
 0x29b   : > { %v1264_v46 = vpop.permute.xlu1 %1263  ;;  %v1938_v12 = vld [vmem:[#allocation3 + $0xe0] sm:$0xff]  ;;  %v2385_v61 = vadd.f32 %v2384_v27, %v2354_v25 }
 0x29c   : > { %1329 = vst.msk [vmem:[#allocation3 + $0xf8] sm:$0xff] %vm1297_vm7, %v1264_v46  ;;  %2681 = vmatprep.mubr.msk.f32.mxu1 %vm1947_vm11, %v1938_v12  ;;  %v1939_v58 = vld [vmem:[#allocation3 + $0xe8] sm:$0xff]  ;;  %v1649_v54 = vpop.permute.xlu0 %1648 }
 0x29d   : > { %2682 = vmatmul.mubr.msk.f32.gmra.mxu1 %vm1947_vm11, %v1939_v58  ;;  %1715 = vst.msk [vmem:[#allocation3 + $0xf0] sm:$0xff] %vm1684_vm9, %v1649_v54 }
 0x29f   : > { %v1458_v40 = vpop.permute.xlu1 %1457 }
 0x2a0   : > { %1523 = vst.msk [vmem:[#allocation3 + $0xf8] sm:$0xff] %vm1491_vm8, %v1458_v40  ;;  %v1842_v39 = vpop.permute.xlu0 %1841 }
 0x2a1   : > { %1908 = vst.msk [vmem:[#allocation3 + $0xf0] sm:$0xff] %vm1877_vm10, %v1842_v39 }
 0x2a3   : > { %v1651_v49 = vpop.permute.xlu1 %1650 }
 0x2a4   : > { %1716 = vst.msk [vmem:[#allocation3 + $0xf8] sm:$0xff] %vm1684_vm9, %v1651_v49 }
 0x2a7   : > { %v1844_v11 = vpop.permute.xlu1 %1843 }
 0x2a8   : > { %1909 = vst.msk [vmem:[#allocation3 + $0xf8] sm:$0xff] %vm1877_vm10, %v1844_v11  ;;  %v2659_v43 = vpop.f32.mrf.mxu0  ;;  %v1940_v5 = vld [vmem:[#allocation3 + $0xf0] sm:$0xff] }
 0x2a9   : > { %2286 = vst [vmem:[%s3825_s5 + $0x68] sm:$0xff] %v2659_v43  ;;  %2684 = vmatprep.mubr.msk.f32.mxu1 %vm1947_vm11, %v1940_v5  ;;  %v2356_v0 = vmul.f32 %v2659_v43, %v2659_v43 }
 0x2aa   : > { %v2174_v8 = vpop.f32.mrf.mxu0 }
 0x2ab   : > { %2285 = vst [vmem:[%s3825_s5 + $0x60] sm:$0xff] %v2174_v8  ;;  %v2316_v28 = vadd.f32 %v2315_v41, %v2174_v8  ;;  %v2355_v15 = vmul.f32 %v2174_v8, %v2174_v8 }
 0x2ad   : > { %v2386_v60 = vadd.f32 %v2385_v61, %v2355_v15  ;;  %v2317_v29 = vadd.f32 %v2659_v43, %v2316_v28 }
 0x2af   : > { %v1941_v42 = vld [vmem:[#allocation3 + $0xf8] sm:$0xff]  ;;  %v2387_v33 = vadd.f32 %v2386_v60, %v2356_v0 }
 0x2b0   : > { %2685 = vmatmul.mubr.msk.f32.gmra.mxu1 %vm1947_vm11, %v1941_v42 }
 0x2bc   : > { %v2662_v26 = vpop.f32.mrf.mxu0 }
 0x2bd   : > { %2288 = vst [vmem:[%s3825_s5 + $0x78] sm:$0xff] %v2662_v26  ;;  %v2358_v35 = vmul.f32 %v2662_v26, %v2662_v26 }
 0x2be   : > { %v2184_v13 = vpop.f32.mrf.mxu0 }
 0x2bf   : > { %2287 = vst [vmem:[%s3825_s5 + $0x70] sm:$0xff] %v2184_v13  ;;  %v2318_v47 = vadd.f32 %v2317_v29, %v2184_v13  ;;  %v2357_v34 = vmul.f32 %v2184_v13, %v2184_v13 }
 0x2c1   : > { %v2319_v17 = vadd.f32 %v2662_v26, %v2318_v47  ;;  %v2388_v2 = vadd.f32 %v2387_v33, %v2357_v34 }
 0x2c3   : > { %v2389_v36 = vadd.f32 %v2388_v2, %v2358_v35 }
 0x2cd   : > { %v2665_v62 = vpop.f32.mrf.mxu1 }
 0x2ce   : > { %2290 = vst [vmem:[%s3825_s5 + $0x88] sm:$0xff] %v2665_v62  ;;  %v2360_v7 = vmul.f32 %v2665_v62, %v2665_v62 }
 0x2cf   : > { %v2194_v37 = vpop.f32.mrf.mxu1 }
 0x2d0   : > { %2289 = vst [vmem:[%s3825_s5 + $0x80] sm:$0xff] %v2194_v37  ;;  %v2320_v45 = vadd.f32 %v2319_v17, %v2194_v37  ;;  %v2359_v10 = vmul.f32 %v2194_v37, %v2194_v37 }
 0x2d2   : > { %v2390_v31 = vadd.f32 %v2389_v36, %v2359_v10  ;;  %v2321_v44 = vadd.f32 %v2665_v62, %v2320_v45 }
 0x2d4   : > { %v2391_v16 = vadd.f32 %v2390_v31, %v2360_v7 }
 0x2e5   : > { %v2668_v48 = vpop.f32.mrf.mxu1 }
 0x2e6   : > { %2292 = vst [vmem:[%s3825_s5 + $0x98] sm:$0xff] %v2668_v48  ;;  %v2362_v19 = vmul.f32 %v2668_v48, %v2668_v48 }
 0x2e7   : > { %v2204_v53 = vpop.f32.mrf.mxu1 }
 0x2e8   : > { %2291 = vst [vmem:[%s3825_s5 + $0x90] sm:$0xff] %v2204_v53  ;;  %v2322_v57 = vadd.f32 %v2321_v44, %v2204_v53  ;;  %v2361_v4 = vmul.f32 %v2204_v53, %v2204_v53 }
 0x2ea   : > { %v2392_v52 = vadd.f32 %v2391_v16, %v2361_v4  ;;  %v2323_v1 = vadd.f32 %v2668_v48, %v2322_v57 }
 0x2ec   : > { %v2393_v20 = vadd.f32 %v2392_v52, %v2362_v19 }
 0x2fd   : > { %v2671_v30 = vpop.f32.mrf.mxu1 }
 0x2fe   : > { %2294 = vst [vmem:[%s3825_s5 + $0xa8] sm:$0xff] %v2671_v30  ;;  %v2364_v22 = vmul.f32 %v2671_v30, %v2671_v30 }
 0x2ff   : > { %v2214_v9 = vpop.f32.mrf.mxu1 }
 0x300   : > { %2293 = vst [vmem:[%s3825_s5 + $0xa0] sm:$0xff] %v2214_v9  ;;  %v2324_v51 = vadd.f32 %v2323_v1, %v2214_v9  ;;  %v2363_v50 = vmul.f32 %v2214_v9, %v2214_v9 }
 0x302   : > { %v2394_v18 = vadd.f32 %v2393_v20, %v2363_v50  ;;  %v2325_v38 = vadd.f32 %v2671_v30, %v2324_v51 }
 0x304   : > { %v2395_v14 = vadd.f32 %v2394_v18, %v2364_v22 }
 0x315   : > { %v2674_v23 = vpop.f32.mrf.mxu1 }
 0x316   : > { %2296 = vst [vmem:[%s3825_s5 + $0xb8] sm:$0xff] %v2674_v23  ;;  %v2366_v21 = vmul.f32 %v2674_v23, %v2674_v23 }
 0x317   : > { %v2224_v63 = vpop.f32.mrf.mxu1 }
 0x318   : > { %2295 = vst [vmem:[%s3825_s5 + $0xb0] sm:$0xff] %v2224_v63  ;;  %v2326_v59 = vadd.f32 %v2325_v38, %v2224_v63  ;;  %v2365_v6 = vmul.f32 %v2224_v63, %v2224_v63 }
 0x31a   : > { %v2396_v55 = vadd.f32 %v2395_v14, %v2365_v6  ;;  %v2327_v24 = vadd.f32 %v2674_v23, %v2326_v59 }
 0x31c   : > { %v2397_v3 = vadd.f32 %v2396_v55, %v2366_v21 }
 0x32d   : > { %v2677_v32 = vpop.f32.mrf.mxu1 }
 0x32e   : > { %2298 = vst [vmem:[%s3825_s5 + $0xc8] sm:$0xff] %v2677_v32  ;;  %v2368_v58 = vmul.f32 %v2677_v32, %v2677_v32 }
 0x32f   : > { %v2234_v25 = vpop.f32.mrf.mxu1 }
 0x330   : > { %2297 = vst [vmem:[%s3825_s5 + $0xc0] sm:$0xff] %v2234_v25  ;;  %v2367_v46 = vmul.f32 %v2234_v25, %v2234_v25  ;;  %v2328_v61 = vadd.f32 %v2327_v24, %v2234_v25 }
 0x332   : > { %v2398_v54 = vadd.f32 %v2397_v3, %v2367_v46  ;;  %v2329_v40 = vadd.f32 %v2677_v32, %v2328_v61 }
 0x334   : > { %v2399_v11 = vadd.f32 %v2398_v54, %v2368_v58 }
 0x345   : > { %v2680_v27 = vpop.f32.mrf.mxu1 }
 0x346   : > { %2300 = vst [vmem:[%s3825_s5 + $0xd8] sm:$0xff] %v2680_v27  ;;  %v2370_v43 = vmul.f32 %v2680_v27, %v2680_v27 }
 0x347   : > { %v2244_v56 = vpop.f32.mrf.mxu1 }
 0x348   : > { %2299 = vst [vmem:[%s3825_s5 + $0xd0] sm:$0xff] %v2244_v56  ;;  %v2369_v39 = vmul.f32 %v2244_v56, %v2244_v56  ;;  %v2330_v49 = vadd.f32 %v2329_v40, %v2244_v56 }
 0x34a   : > { %v2400_v5 = vadd.f32 %v2399_v11, %v2369_v39  ;;  %v2331_v8 = vadd.f32 %v2680_v27, %v2330_v49 }
 0x34c   : > { %v2401_v0 = vadd.f32 %v2400_v5, %v2370_v43 }
 0x35d   : > { %v2683_v41 = vpop.f32.mrf.mxu1 }
 0x35e   : > { %2302 = vst [vmem:[%s3825_s5 + $0xe8] sm:$0xff] %v2683_v41  ;;  %v2372_v60 = vmul.f32 %v2683_v41, %v2683_v41 }
 0x35f   : > { %v2254_v12 = vpop.f32.mrf.mxu1 }
 0x360   : > { %2301 = vst [vmem:[%s3825_s5 + $0xe0] sm:$0xff] %v2254_v12  ;;  %v2371_v28 = vmul.f32 %v2254_v12, %v2254_v12  ;;  %v2332_v15 = vadd.f32 %v2331_v8, %v2254_v12 }
 0x362   : > { %v2402_v29 = vadd.f32 %v2401_v0, %v2371_v28  ;;  %v2333_v33 = vadd.f32 %v2683_v41, %v2332_v15 }
 0x364   : > { %v2403_v34 = vadd.f32 %v2402_v29, %v2372_v60 }
 0x370   : > { %v2686_v42 = vpop.f32.mrf.mxu1 }
 0x371   : > { %2304 = vst [vmem:[%s3825_s5 + $0xf8] sm:$0xff] %v2686_v42 }
 0x372   : > { %v2264_v26 = vpop.f32.mrf.mxu1 }
 0x373   : > { %2303 = vst [vmem:[%s3825_s5 + $0xf0] sm:$0xff] %v2264_v26  ;;  %v2334_v13 = vadd.f32 %v2333_v33, %v2264_v26  ;;  %v2373_v47 = vmul.f32 %v2264_v26, %v2264_v26 }
 0x374   : > { %2764 = shalt.err (!%p2761_p3)
}
 0x375   : > { %s2765_s25 = scalar_lea.hbm %s3935_s10, 4096  ;;  %s2769_s29 = scalar_lea.hbm %s4008_s2, 8192 }
 0x376   : > { %p2766_p4 = scmp.ne.s32.totalorder %s3935_s10, %s2765_s25  ;;  %p2770_p9 = scmp.lt.s32.totalorder %s3935_s10, %s4008_s2 }
 0x377   : > { %p2771_p10 = scmp.lt.s32.totalorder %s2769_s29, %s2765_s25 }
 0x378   : > { %p2767_p7 = pnand %p2766_p4, %p2913_p5 }
 0x379   : > { %p2772_p11 = por %p2771_p10, %p2770_p9 }
 0x37a   : > { %p2768_p8 = pneg %p2767_p7 }
 0x37c   : > { %p2773_p12 = pnand %p2772_p11, %p2768_p8 }
 0x37e   : > { %2776 = shalt.err (!%p2773_p12)
}
 0x37f   : > { %s2853_s6 = smov 128   ;;  %v2374_v35 = vmul.f32 %v2686_v42, %v2686_v42  ;;  %v2335_v17 = vadd.f32 %v2686_v42, %v2334_v13  ;;  %v2404_v2 = vadd.f32 %v2403_v34, %v2373_v47  ;;  %s2547_s8 = sshll.u32 %s3814_s28, 1  ;;  %vm2413_vm12 = vcmask 1040384  }
 0x380   : > { %2697 = dma.vmem_to_hbm [thread:$0]  (%p2913_p5), %s3938_s7, 4096, %s3935_s10, %s2417_s11, %s2853_s6, %s2853_s6, %s2845_s30  }
 0x381   : > { %v2336_v36 = vrot.slane %v2335_v17, 4  ;;  %v2405_v62 = vadd.f32 %v2404_v2, %v2374_v35  ;;  %s2587_s9 = sshll.u32 %s2896_s16, 5  ;;  %s174_s30 = scalar_lea.vmem [#allocation6], %s2547_s8 }
 0x382   : > { %s2451_s7 = sshll.u32 %s174_s30, 4  ;;  %s3970_s17 = scalar_lea.hbm %s4009_s3, %s2587_s9  ;;  %s2452_s7 = int_to_ptr.vmem [resolvable:$true] %s2451_s7 }
 0x383   : > { %v2337_v37 = vadd.f32 %v2336_v36, %v2335_v17  ;;  %v2406_v7 = vrot.slane %v2405_v62, 4  ;;  %s2422_s19 = scalar_lea.sflag [#allocation7], %s3814_s28  ;;  %s2777_s20 = scalar_lea.vmem %s2452_s7, 32 }
 0x384   : > { %p2778_p13 = scmp.ne.s32.totalorder %s2452_s7, %s2777_s20  ;;  %s2854_s16 = smov [#allocation6]  }
 0x385   : > { %v2338_v45 = vrot.slane %v2337_v37, 2  ;;  %v2407_v10 = vadd.f32 %v2406_v7, %v2405_v62  ;;  %s2781_s24 = sshll.u32 %s2854_s16, 4  ;;  %s2782_s24 = int_to_ptr.vmem [resolvable:$false] %s2781_s24 }
 0x386   : > { %p2779_p0 = pnand %p2778_p13, %p2913_p5  ;;  %s2783_s25 = scalar_lea.vmem %s2782_s24, 64 }
 0x387   : > { %v2339_v31 = vadd.f32 %v2338_v45, %v2337_v37  ;;  %v2408_v44 = vrot.slane %v2407_v10, 2  ;;  %p2784_p2 = scmp.lt.s32.totalorder %s2452_s7, %s2782_s24  ;;  %p2785_p3 = scmp.lt.s32.totalorder %s2783_s25, %s2777_s20 }
 0x388   : > { %p2780_p1 = pneg %p2779_p0 }
 0x389   : > { %v2340_v16 = vrot.slane %v2339_v31, 1  ;;  %v2409_v48 = vadd.f32 %v2408_v44, %v2407_v10  ;;  %p2786_p4 = por %p2785_p3, %p2784_p2 }
 0x38b   : > { %v2410_v53 = vrot.slane %v2409_v48, 1  ;;  %v2341_v19 = vadd.f32 %v2340_v16, %v2339_v31  ;;  %p2787_p7 = pnand %p2786_p4, %p2780_p1 }
 0x38d   : > { %v2411_v57 = vadd.f32 %v2410_v53, %v2409_v48 }
 0x38f   : > { %v2414_v4 = vsel %vm2413_vm12, %v2341_v19, %v2411_v57 }
 0x390   : > { %2415 = vst [vmem:[%s174_s30] sm:$0x3] %v2414_v4 }
 0x391   : > { %2790 = shalt.err (!%p2787_p7)
}
 0x392   : > { %s2791_s26 = scalar_lea.hbm %s3970_s17, 32  ;;  %s2795_s29 = scalar_lea.hbm %s4009_s3, 64 }
 0x393   : > { %p2792_p8 = scmp.ne.s32.totalorder %s3970_s17, %s2791_s26  ;;  %p2796_p11 = scmp.lt.s32.totalorder %s3970_s17, %s4009_s3 }
 0x394   : > { %p2797_p12 = scmp.lt.s32.totalorder %s2795_s29, %s2791_s26 }
 0x395   : > { %p2793_p9 = pnand %p2792_p8, %p2913_p5 }
 0x396   : > { %p2798_p13 = por %p2797_p12, %p2796_p11 }
 0x397   : > { %p2794_p10 = pneg %p2793_p9 }
 0x399   : > { %p2799_p0 = pnand %p2798_p13, %p2794_p10 }
 0x39b   : > { %2802 = shalt.err (!%p2799_p0)
}
 0x39c   : > { %2698 = dma.vmem_to_hbm [thread:$0]  (%p2913_p5), %s2452_s7, 32, %s3970_s17, %s2422_s19  }
 0x39d PF: > { %p2708_p1 = scmp.ge.s32.totalorder %s2841_s15, 2  ;;  %s2463_s6 = sand.u32 1, %s2829_s12  }
 0x39e   : > { %s2464_s8 = scalar_lea.sflag [#allocation5], %s2463_s6 }
 0x39f   : > { %p2702_p2 = pnand %p2708_p1, %p2917_p6 }
 0x3a1   : > { %p2703_p3 = pneg %p2702_p2 }
 0x3a3   : > { %2820 = dma.done.wait (%p2703_p3), %s2464_s8, 4096  }
 0x3a4   : > { %2822 = vsyncadd (%p2703_p3), %s2464_s8, 4294963200  ;;  %s2473_s9 = scalar_lea.sflag [#allocation7], %s2463_s6 }
 0x3a5   : > { %2824 = dma.done.wait (%p2703_p3), %s2473_s9, 32  }
 0x3a6   : > { %2826 = vsyncadd (%p2703_p3), %s2473_s9, 4294967264  ;;  %p17_p5 = scmp.ge.s32.totalorder %s2900_s18, 4   ;;  %s4012_s12 = smov %s2833_s13 }
 0x3a7   : > { %s4013_s13 = smov %s2837_s14  ;;  %s4014_s14 = smov %s2911_s21 }
 0x3a8   : > { %s4015_s15 = smov %s2900_s18  ;;  %19 = sbr.rel (!%p17_p5) target bundleno = 5 (0x5), region = 82 }
 0x3ad   :  { %2478 = vsyncpa [#allocation5], 1 }
 0x3ae   :  { %2480 = vsyncpa [#allocation5 + $0x1], 1 }
 0x3af   :  { %2481 = vsyncpa [#allocation7], 1 }
 0x3b0   :  { %2483 = vsyncpa [#allocation7 + $0x1], 1 }

</bundles_post_ra>
